<compile_context>
chip_gen: v6e
topology: v6e:2x2x1
jax: 0.10.0
libtpu: 0.0.40
codegen_flags: <defaults>
</compile_context>

<pallas_src>
import jax
import jax.numpy as jnp
from jax.experimental import pallas as pl
from jax.experimental.pallas import tpu as pltpu

EPS = 1e-5


def _fused_kernel(x_ref, s_ref, w_ref, g_ref, b_ref, o_ref):
    # One Cout block:  z = (x * s) @ w  followed by training-mode BN over (N, HW).
    # x_ref: (N, P, Cin)  f32   channels-last activations (P = H*W)
    # s_ref: (N, 1, Cin)  f32   per-sample, per-input-channel multiplier (x364)
    # w_ref: (Cin, BC)    bf16  1x1-conv weight block (Cout on the lane axis)
    # g_ref: (1, BC)      f32   BN gamma block (row vector)
    # b_ref: (1, BC)      f32   BN beta  block (row vector)
    # o_ref: (N, P, BC)   f32   output block (channels-last)
    n, p, _ = x_ref.shape
    bc = w_ref.shape[1]
    inv_total = 1.0 / (n * p)

    w = w_ref[...]

    # Pass 1: per-sample MXU matmul; write raw z through o_ref (no live z list in
    # vregs) and accumulate the per-channel sum for the mean.
    # TODO(synk): for N > 1 with HW % 8 == 0 the N matmuls can be merged into a single
    #             (N*P, Cin) @ (Cin, BC) dot for better MXU column utilization.
    s1 = jnp.zeros((1, bc), jnp.float32)
    for i in range(n):  # static unroll; N is small (1 in the reference module)
        xs = (x_ref[i] * s_ref[i]).astype(jnp.bfloat16)            # (P, Cin), f32 mul then bf16
        z = jnp.dot(xs, w, preferred_element_type=jnp.float32)     # (P, BC) on the MXU
        o_ref[i] = z.astype(o_ref.dtype)
        s1 = s1 + jnp.sum(z, axis=0, keepdims=True)
    mean = s1 * inv_total                                          # (1, BC)

    # Pass 2: centered (biased) variance -- z is resident in o_ref, cheap VMEM re-read.
    s2 = jnp.zeros((1, bc), jnp.float32)
    for i in range(n):
        d = o_ref[i] - mean
        s2 = s2 + jnp.sum(d * d, axis=0, keepdims=True)
    var = s2 * inv_total

    a = jax.lax.rsqrt(var + EPS) * g_ref[...]                      # (1, BC)
    b = b_ref[...] - mean * a                                      # (1, BC)

    # Pass 3: normalize in place; lane-dense stores (BC is a multiple of 128 or full).
    for i in range(n):
        o_ref[i] = (o_ref[i] * a + b).astype(o_ref.dtype)


def prepare_params(conv_w, gamma, beta):
    """One-time parameter prep (hoisted out of the per-call hot path)."""
    cout, cin = conv_w.shape[0], conv_w.shape[1]
    # (Cout, Cin, 1, 1) -> (Cin, Cout) bf16: Cout lands on the lane axis in-kernel.
    w_t = jnp.transpose(conv_w.reshape(cout, cin)).astype(jnp.bfloat16)
    gamma_row = gamma.reshape(1, cout).astype(jnp.float32)
    beta_row = beta.reshape(1, cout).astype(jnp.float32)
    return w_t, gamma_row, beta_row


@jax.jit
def mul_conv_bn(x359, x364, w_t, gamma_row, beta_row):
    """x359: (N, Cin, H, W), x364: (N, Cin, 1, 1), w_t: (Cin, Cout) bf16."""
    n, cin, h, wdim = x359.shape
    cout = w_t.shape[1]
    p = h * wdim

    # Channels-last (lane-dense) presentation; wrapper-side layout plumbing only,
    # the kernel itself never transposes.
    x_nhwc = jnp.transpose(x359, (0, 2, 3, 1)).reshape(n, p, cin)   # (N, P, Cin)
    s_row = x364.reshape(n, 1, cin)                                 # (N, 1, Cin)

    bc = 128 if cout > 128 else cout           # Cout block size on the lane axis
    grid = (pl.cdiv(cout, bc),)

    flops = 2 * n * p * cin * cout + 8 * n * p * cout
    bytes_accessed = (x_nhwc.size * 4 + s_row.size * 4 + w_t.size * 2
                      + gamma_row.size * 4 + beta_row.size * 4 + n * p * cout * 4)

    out = pl.pallas_call(
        _fused_kernel,
        out_shape=jax.ShapeDtypeStruct((n, p, cout), x359.dtype),
        grid=grid,
        in_specs=[
            pl.BlockSpec((n, p, cin), lambda j: (0, 0, 0)),   # x: resident across Cout blocks
            pl.BlockSpec((n, 1, cin), lambda j: (0, 0, 0)),   # s: resident
            pl.BlockSpec((cin, bc), lambda j: (0, j)),        # weight block (pipelined DMA)
            pl.BlockSpec((1, bc), lambda j: (0, j)),          # gamma block
            pl.BlockSpec((1, bc), lambda j: (0, j)),          # beta block
        ],
        out_specs=pl.BlockSpec((n, p, bc), lambda j: (0, 0, j)),
        compiler_params=pltpu.CompilerParams(
            dimension_semantics=("parallel",)),               # Cout blocks independent -> megacore
        cost_estimate=pl.CostEstimate(
            flops=flops, transcendentals=cout, bytes_accessed=bytes_accessed),
    )(x_nhwc, s_row, w_t, gamma_row, beta_row)

    # (N, P, Cout) -> (N, Cout, H, W)
    return jnp.transpose(out.reshape(n, h, wdim, cout), (0, 3, 1, 2))


if __name__ == "__main__":
    key = jax.random.PRNGKey(0)
    k1, k2, k3, k4, k5 = jax.random.split(key, 5)

    N, Cin, H, W = 1, 1632, 7, 7
    Cout = 272

    x359 = jax.random.normal(k1, (N, Cin, H, W), dtype=jnp.float32)
    x364 = jax.random.normal(k2, (N, Cin, 1, 1), dtype=jnp.float32)

    # Deterministic synthetic parameters (shapes mirror the module's __init__).
    fan_in = Cin  # 1x1 kernel
    bound = 1.0 / (fan_in ** 0.5)
    conv_w = jax.random.uniform(k3, (Cout, Cin, 1, 1), dtype=jnp.float32,
                                minval=-bound, maxval=bound)
    gamma = 1.0 + 0.1 * jax.random.normal(k4, (Cout,), dtype=jnp.float32)
    beta = 0.1 * jax.random.normal(k5, (Cout,), dtype=jnp.float32)

    w_t, gamma_row, beta_row = prepare_params(conv_w, gamma, beta)

    out = mul_conv_bn(x359, x364, w_t, gamma_row, beta_row)
    jax.block_until_ready(out)
    assert out.shape == (N, Cout, H, W)

    # Pure-JAX f32 reference (loose tolerance for the bf16 MXU path).
    xs_ref = (x359 * x364).reshape(N, Cin, H * W)
    z_ref = jnp.einsum('ck,nkp->ncp', conv_w.reshape(Cout, Cin), xs_ref)
    mean_ref = jnp.mean(z_ref, axis=(0, 2), keepdims=True)
    var_ref = jnp.mean((z_ref - mean_ref) ** 2, axis=(0, 2), keepdims=True)
    ref = ((z_ref - mean_ref) * jax.lax.rsqrt(var_ref + EPS)
           * gamma.reshape(1, Cout, 1) + beta.reshape(1, Cout, 1)
           ).reshape(N, Cout, H, W)
    err = float(jnp.max(jnp.abs(out - ref)))
    assert err < 0.1, f"max abs err {err}"

    print("KERNEL_OK")
</pallas_src>

<mosaic_0001>
module attributes {stable_mosaic.version = 11 : i64} {
  func.func @_fused_kernel(%arg0: i32, %arg1: memref<1x49x1632xf32, #tpu.memory_space<vmem>>, %arg2: memref<1x1x1632xf32, #tpu.memory_space<vmem>>, %arg3: memref<1632x128xbf16, #tpu.memory_space<vmem>>, %arg4: memref<1x128xf32, #tpu.memory_space<vmem>>, %arg5: memref<1x128xf32, #tpu.memory_space<vmem>>, %arg6: memref<1x49x128xf32, #tpu.memory_space<vmem>>) attributes {dimension_semantics = [#tpu.dimension_semantics<parallel>], iteration_bounds = array<i64: 3>, scalar_prefetch = 0 : i64, scratch_operands = 0 : i64, tpu.core_type = #tpu.core_type<tc>, window_params = [{pipeline_mode = #tpu.pipeline_mode<synchronous>, transform_indices = @transform_0, window_bounds = array<i64: 1, 49, 1632>}, {pipeline_mode = #tpu.pipeline_mode<synchronous>, transform_indices = @transform_1, window_bounds = array<i64: 1, 1, 1632>}, {transform_indices = @transform_2, window_bounds = array<i64: 1632, 128>}, {transform_indices = @transform_3, window_bounds = array<i64: 1, 128>}, {transform_indices = @transform_4, window_bounds = array<i64: 1, 128>}, {transform_indices = @transform_5, window_bounds = array<i64: 1, 49, 128>}]} {
    %c0 = arith.constant 0 : index
    %c0_0 = arith.constant 0 : index
    %0 = vector.load %arg3[%c0, %c0_0] : memref<1632x128xbf16, #tpu.memory_space<vmem>>, vector<1632x128xbf16>
    %cst = arith.constant 0.000000e+00 : f32
    %1 = vector.broadcast %cst : f32 to vector<1x128xf32>
    %c0_1 = arith.constant 0 : index
    %c0_2 = arith.constant 0 : index
    %c0_3 = arith.constant 0 : index
    %2 = vector.load %arg1[%c0_1, %c0_2, %c0_3] : memref<1x49x1632xf32, #tpu.memory_space<vmem>>, vector<1x49x1632xf32>
    %3 = vector.shape_cast %2 : vector<1x49x1632xf32> to vector<49x1632xf32>
    %c0_4 = arith.constant 0 : index
    %c0_5 = arith.constant 0 : index
    %c0_6 = arith.constant 0 : index
    %4 = vector.load %arg2[%c0_4, %c0_5, %c0_6] : memref<1x1x1632xf32, #tpu.memory_space<vmem>>, vector<1x1x1632xf32>
    %5 = vector.shape_cast %4 : vector<1x1x1632xf32> to vector<1x1632xf32>
    %6 = vector.broadcast %5 : vector<1x1632xf32> to vector<49x1632xf32>
    %7 = arith.mulf %3, %6 : vector<49x1632xf32>
    %8 = arith.truncf %7 : vector<49x1632xf32> to vector<49x1632xbf16>
    %cst_7 = arith.constant dense<0.000000e+00> : vector<49x128xf32>
    %9 = tpu.matmul %8, %0, %cst_7 {dimension_numbers = #tpu.dot_dimension_numbers<[1], [0], [0], [1], [0, 0, 1, 1], [], []>} : vector<49x1632xbf16>, vector<1632x128xbf16>, vector<49x128xf32> -> vector<49x128xf32>
    %c0_8 = arith.constant 0 : index
    %c0_9 = arith.constant 0 : index
    %c0_10 = arith.constant 0 : index
    %10 = vector.load %arg6[%c0_8, %c0_9, %c0_10] : memref<1x49x128xf32, #tpu.memory_space<vmem>>, vector<1x49x128xf32>
    %11 = vector.shape_cast %10 : vector<1x49x128xf32> to vector<49x128xf32>
    %12 = vector.shape_cast %9 : vector<49x128xf32> to vector<1x49x128xf32>
    tpu.vector_store %arg6[%c0_8, %c0_9, %c0_10], %12 {strides = array<i32>} : memref<1x49x128xf32, #tpu.memory_space<vmem>>, vector<1x49x128xf32>,
    %cst_11 = arith.constant dense<0.000000e+00> : vector<128xf32>
    %13 = vector.multi_reduction <add>, %9, %cst_11 [0] : vector<49x128xf32> to vector<128xf32>
    %14 = vector.shape_cast %13 : vector<128xf32> to vector<1x128xf32>
    %15 = arith.addf %1, %14 : vector<1x128xf32>
    %cst_12 = arith.constant 0.0204081628 : f32
    %16 = vector.broadcast %cst_12 : f32 to vector<1x128xf32>
    %17 = arith.mulf %15, %16 : vector<1x128xf32>
    %cst_13 = arith.constant 0.000000e+00 : f32
    %18 = vector.broadcast %cst_13 : f32 to vector<1x128xf32>
    %c0_14 = arith.constant 0 : index
    %c0_15 = arith.constant 0 : index
    %c0_16 = arith.constant 0 : index
    %19 = vector.load %arg6[%c0_14, %c0_15, %c0_16] : memref<1x49x128xf32, #tpu.memory_space<vmem>>, vector<1x49x128xf32>
    %20 = vector.shape_cast %19 : vector<1x49x128xf32> to vector<49x128xf32>
    %21 = vector.broadcast %17 : vector<1x128xf32> to vector<49x128xf32>
    %22 = arith.subf %20, %21 : vector<49x128xf32>
    %23 = arith.mulf %22, %22 : vector<49x128xf32>
    %cst_17 = arith.constant dense<0.000000e+00> : vector<128xf32>
    %24 = vector.multi_reduction <add>, %23, %cst_17 [0] : vector<49x128xf32> to vector<128xf32>
    %25 = vector.shape_cast %24 : vector<128xf32> to vector<1x128xf32>
    %26 = arith.addf %18, %25 : vector<1x128xf32>
    %cst_18 = arith.constant 0.0204081628 : f32
    %27 = vector.broadcast %cst_18 : f32 to vector<1x128xf32>
    %28 = arith.mulf %26, %27 : vector<1x128xf32>
    %cst_19 = arith.constant 9.99999974E-6 : f32
    %29 = vector.broadcast %cst_19 : f32 to vector<1x128xf32>
    %30 = arith.addf %28, %29 : vector<1x128xf32>
    %31 = math.rsqrt %30 : vector<1x128xf32>
    %c0_20 = arith.constant 0 : index
    %c0_21 = arith.constant 0 : index
    %32 = vector.load %arg4[%c0_20, %c0_21] : memref<1x128xf32, #tpu.memory_space<vmem>>, vector<1x128xf32>
    %33 = arith.mulf %31, %32 : vector<1x128xf32>
    %c0_22 = arith.constant 0 : index
    %c0_23 = arith.constant 0 : index
    %34 = vector.load %arg5[%c0_22, %c0_23] : memref<1x128xf32, #tpu.memory_space<vmem>>, vector<1x128xf32>
    %35 = arith.mulf %17, %33 : vector<1x128xf32>
    %36 = arith.subf %34, %35 : vector<1x128xf32>
    %c0_24 = arith.constant 0 : index
    %c0_25 = arith.constant 0 : index
    %c0_26 = arith.constant 0 : index
    %37 = vector.load %arg6[%c0_24, %c0_25, %c0_26] : memref<1x49x128xf32, #tpu.memory_space<vmem>>, vector<1x49x128xf32>
    %38 = vector.shape_cast %37 : vector<1x49x128xf32> to vector<49x128xf32>
    %39 = vector.broadcast %33 : vector<1x128xf32> to vector<49x128xf32>
    %40 = arith.mulf %38, %39 : vector<49x128xf32>
    %41 = vector.broadcast %36 : vector<1x128xf32> to vector<49x128xf32>
    %42 = arith.addf %40, %41 : vector<49x128xf32>
    %c0_27 = arith.constant 0 : index
    %c0_28 = arith.constant 0 : index
    %c0_29 = arith.constant 0 : index
    %43 = vector.load %arg6[%c0_27, %c0_28, %c0_29] : memref<1x49x128xf32, #tpu.memory_space<vmem>>, vector<1x49x128xf32>
    %44 = vector.shape_cast %43 : vector<1x49x128xf32> to vector<49x128xf32>
    %45 = vector.shape_cast %42 : vector<49x128xf32> to vector<1x49x128xf32>
    tpu.vector_store %arg6[%c0_27, %c0_28, %c0_29], %45 {strides = array<i32>} : memref<1x49x128xf32, #tpu.memory_space<vmem>>, vector<1x49x128xf32>,
    return
  }
  func.func @transform_0(%arg0: i32) -> (i32, i32, i32) {
    %c0_i32 = arith.constant 0 : i32
    %c0_i32_0 = arith.constant 0 : i32
    %c0_i32_1 = arith.constant 0 : i32
    %c0_i32_2 = arith.constant 0 : i32
    return %c0_i32, %c0_i32_0, %c0_i32_1 : i32, i32, i32
  }
  func.func @transform_1(%arg0: i32) -> (i32, i32, i32) {
    %c0_i32 = arith.constant 0 : i32
    %c0_i32_0 = arith.constant 0 : i32
    %c0_i32_1 = arith.constant 0 : i32
    %c0_i32_2 = arith.constant 0 : i32
    return %c0_i32, %c0_i32_0, %c0_i32_1 : i32, i32, i32
  }
  func.func @transform_2(%arg0: i32) -> (i32, i32) {
    %c0_i32 = arith.constant 0 : i32
    %c0_i32_0 = arith.constant 0 : i32
    return %c0_i32, %arg0 : i32, i32
  }
  func.func @transform_3(%arg0: i32) -> (i32, i32) {
    %c0_i32 = arith.constant 0 : i32
    %c0_i32_0 = arith.constant 0 : i32
    return %c0_i32, %arg0 : i32, i32
  }
  func.func @transform_4(%arg0: i32) -> (i32, i32) {
    %c0_i32 = arith.constant 0 : i32
    %c0_i32_0 = arith.constant 0 : i32
    return %c0_i32, %arg0 : i32, i32
  }
  func.func @transform_5(%arg0: i32) -> (i32, i32, i32) {
    %c0_i32 = arith.constant 0 : i32
    %c0_i32_0 = arith.constant 0 : i32
    %c0_i32_1 = arith.constant 0 : i32
    return %c0_i32, %c0_i32_0, %arg0 : i32, i32, i32
  }
}

</mosaic_0001>

<bundles_post_ra>
// kernel: mul_conv_bn.1
= control target key start
LH: loop header
LB: loop body
LE: loop exit
PB: predicated region body
PF: predicated region fallthrough
CT: control target
= control target key end

     0   :  { %s3502_s18 = smov 0   ;;  %s3504_s19 = smov 0   ;;  %s4622_s0 = inlined_call_operand.vmem [shape: f32[1,49,1632], index: 0, kind: input, shape index: {}]   ;;  %s4623_s1 = inlined_call_operand.vmem [shape: f32[1,1,1632], index: 1, kind: input, shape index: {}]   ;;  %s4624_s2 = inlined_call_operand.vmem [shape: bf16[1632,272], index: 2, kind: input, shape index: {}]   ;;  %s4625_s3 = inlined_call_operand.vmem [shape: f32[1,272], index: 3, kind: input, shape index: {}]   ;;  %s4626_s4 = inlined_call_operand.vmem [shape: f32[1,272], index: 4, kind: input, shape index: {}]   ;;  %s4627_s5 = inlined_call_operand.vmem [shape: f32[1,49,272], index: 5, kind: output, shape index: {}]  }
   0x1   :  { %s3506_s20 = smov 0  }
   0x2 LB: > { %s3518_s21 = sadd.s32 4294967295, %s3470_s20   ;;  %s3521_s22 = sadd.s32 1, %s3470_s20   ;;  %s3470_s20 = sphi %s3506_s20, %s4641_s20   ;;  %s3466_s19 = sphi %s3504_s19, %s4640_s19   ;;  %s3462_s18 = sphi %s3502_s18, %s4639_s18  }
   0x3   : > { %s61_s23 = ssub.s32 %s3470_s20, %s3521_s22  ;;  %s64_s24 = sadd.s32 1, %s3466_s19 }
   0x4   : > { %p62_p0 = scmp.eq.s32.totalorder %s61_s23, 0  ;;  %p71_p1 = scmp.ne.s32.totalorder %s3466_s19, %s3462_s18 }
   0x5   : > { %p72_p2 = scmp.eq.s32.totalorder %s3470_s20, 0  ;;  %p153_p3 = scmp.eq.s32.totalorder %s3518_s21, 2 }
   0x6   : > { %s3531_s25 = scalar_select %p62_p0, %s3466_s19, %s64_s24  }
   0x7   : > { %p73_p4 = por %p72_p2, %p71_p1  ;;  %p3533_p5 = por %p153_p3, %p71_p1 }
   0x8   : > { %p2923_p6 = scmp.ge.s32.totalorder %s3470_s20, 3 }
   0xa   : > { %181 = sbr.rel (%p2923_p6) target bundleno = 155 (0x9b), region = 24 }
   0xf   : > { %184 = sbr.rel (!%p73_p4) target bundleno = 155 (0x9b), region = 28  ;;  %s186_s27 = sand.u32 (%p73_p4), 1, %s3466_s19  }
  0x10   : > { %s2924_s28 = sshll.u32 (%p73_p4), %s3470_s20, 2  ;;  %s3317_s29 = smul.u32 (%p73_p4), 816, %s186_s27 }
  0x11   : > { %s3543_s7 = scalar_lea.vmem (%p73_p4), %s4624_s2, %s2924_s28 }
  0x12   : > { %v207_v0 = vld [vmem:[%s3543_s7] sm:$0xf] (%p73_p4)  ;;  %v209_v1 = vld [vmem:[%s3543_s7 + $0xc] sm:$0xf] (%p73_p4)  ;;  %v211_v2 = vld [vmem:[%s3543_s7 + $0x18] sm:$0xf] (%p73_p4) }
  0x13   : > { %v213_v3 = vld [vmem:[%s3543_s7 + $0x24] sm:$0xf] (%p73_p4)  ;;  %v215_v4 = vld [vmem:[%s3543_s7 + $0x30] sm:$0xf] (%p73_p4)  ;;  %s3550_s8 = scalar_lea.vmem (%p73_p4), [#allocation2], %s3317_s29 }
  0x14   : > { %208 = vst [vmem:[%s3550_s8] sm:$0xf] %v207_v0  ;;  %210 = vst [vmem:[%s3550_s8 + $0x4] sm:$0xf] %v209_v1  ;;  %v217_v5 = vld [vmem:[%s3543_s7 + $0x3c] sm:$0xf] }
  0x15   : > { %212 = vst [vmem:[%s3550_s8 + $0x8] sm:$0xf] %v211_v2  ;;  %214 = vst [vmem:[%s3550_s8 + $0xc] sm:$0xf] %v213_v3  ;;  %v219_v6 = vld [vmem:[%s3543_s7 + $0x48] sm:$0xf] }
  0x16   : > { %216 = vst [vmem:[%s3550_s8 + $0x10] sm:$0xf] %v215_v4  ;;  %v221_v7 = vld [vmem:[%s3543_s7 + $0x54] sm:$0xf]  ;;  %218 = vst [vmem:[%s3550_s8 + $0x14] sm:$0xf] %v217_v5 }
  0x17   : > { %220 = vst [vmem:[%s3550_s8 + $0x18] sm:$0xf] %v219_v6  ;;  %222 = vst [vmem:[%s3550_s8 + $0x1c] sm:$0xf] %v221_v7  ;;  %v223_v8 = vld [vmem:[%s3543_s7 + $0x60] sm:$0xf] }
  0x18   : > { %v225_v9 = vld [vmem:[%s3543_s7 + $0x6c] sm:$0xf]  ;;  %v227_v10 = vld [vmem:[%s3543_s7 + $0x78] sm:$0xf]  ;;  %224 = vst [vmem:[%s3550_s8 + $0x20] sm:$0xf] %v223_v8 }
  0x19   : > { %226 = vst [vmem:[%s3550_s8 + $0x24] sm:$0xf] %v225_v9  ;;  %228 = vst [vmem:[%s3550_s8 + $0x28] sm:$0xf] %v227_v10  ;;  %v229_v11 = vld [vmem:[%s3543_s7 + $0x84] sm:$0xf] }
  0x1a   : > { %v231_v12 = vld [vmem:[%s3543_s7 + $0x90] sm:$0xf]  ;;  %v233_v13 = vld [vmem:[%s3543_s7 + $0x9c] sm:$0xf]  ;;  %230 = vst [vmem:[%s3550_s8 + $0x2c] sm:$0xf] %v229_v11 }
  0x1b   : > { %232 = vst [vmem:[%s3550_s8 + $0x30] sm:$0xf] %v231_v12  ;;  %234 = vst [vmem:[%s3550_s8 + $0x34] sm:$0xf] %v233_v13  ;;  %v235_v14 = vld [vmem:[%s3543_s7 + $0xa8] sm:$0xf] }
  0x1c   : > { %v237_v15 = vld [vmem:[%s3543_s7 + $0xb4] sm:$0xf]  ;;  %v239_v16 = vld [vmem:[%s3543_s7 + $0xc0] sm:$0xf]  ;;  %236 = vst [vmem:[%s3550_s8 + $0x38] sm:$0xf] %v235_v14 }
  0x1d   : > { %238 = vst [vmem:[%s3550_s8 + $0x3c] sm:$0xf] %v237_v15  ;;  %240 = vst [vmem:[%s3550_s8 + $0x40] sm:$0xf] %v239_v16  ;;  %v241_v17 = vld [vmem:[%s3543_s7 + $0xcc] sm:$0xf] }
  0x1e   : > { %v243_v18 = vld [vmem:[%s3543_s7 + $0xd8] sm:$0xf]  ;;  %v245_v19 = vld [vmem:[%s3543_s7 + $0xe4] sm:$0xf]  ;;  %242 = vst [vmem:[%s3550_s8 + $0x44] sm:$0xf] %v241_v17 }
  0x1f   : > { %244 = vst [vmem:[%s3550_s8 + $0x48] sm:$0xf] %v243_v18  ;;  %246 = vst [vmem:[%s3550_s8 + $0x4c] sm:$0xf] %v245_v19  ;;  %v247_v20 = vld [vmem:[%s3543_s7 + $0xf0] sm:$0xf] }
  0x20   : > { %v249_v21 = vld [vmem:[%s3543_s7 + $0xfc] sm:$0xf]  ;;  %v251_v22 = vld [vmem:[%s3543_s7 + $0x108] sm:$0xf]  ;;  %248 = vst [vmem:[%s3550_s8 + $0x50] sm:$0xf] %v247_v20 }
  0x21   : > { %250 = vst [vmem:[%s3550_s8 + $0x54] sm:$0xf] %v249_v21  ;;  %252 = vst [vmem:[%s3550_s8 + $0x58] sm:$0xf] %v251_v22  ;;  %v253_v23 = vld [vmem:[%s3543_s7 + $0x114] sm:$0xf] }
  0x22   : > { %v255_v24 = vld [vmem:[%s3543_s7 + $0x120] sm:$0xf]  ;;  %v257_v25 = vld [vmem:[%s3543_s7 + $0x12c] sm:$0xf]  ;;  %254 = vst [vmem:[%s3550_s8 + $0x5c] sm:$0xf] %v253_v23 }
  0x23   : > { %256 = vst [vmem:[%s3550_s8 + $0x60] sm:$0xf] %v255_v24  ;;  %258 = vst [vmem:[%s3550_s8 + $0x64] sm:$0xf] %v257_v25  ;;  %v259_v26 = vld [vmem:[%s3543_s7 + $0x138] sm:$0xf] }
  0x24   : > { %v261_v27 = vld [vmem:[%s3543_s7 + $0x144] sm:$0xf]  ;;  %v263_v28 = vld [vmem:[%s3543_s7 + $0x150] sm:$0xf]  ;;  %260 = vst [vmem:[%s3550_s8 + $0x68] sm:$0xf] %v259_v26 }
  0x25   : > { %262 = vst [vmem:[%s3550_s8 + $0x6c] sm:$0xf] %v261_v27  ;;  %264 = vst [vmem:[%s3550_s8 + $0x70] sm:$0xf] %v263_v28  ;;  %v265_v29 = vld [vmem:[%s3543_s7 + $0x15c] sm:$0xf] }
  0x26   : > { %v267_v30 = vld [vmem:[%s3543_s7 + $0x168] sm:$0xf]  ;;  %v269_v31 = vld [vmem:[%s3543_s7 + $0x174] sm:$0xf]  ;;  %266 = vst [vmem:[%s3550_s8 + $0x74] sm:$0xf] %v265_v29 }
  0x27   : > { %268 = vst [vmem:[%s3550_s8 + $0x78] sm:$0xf] %v267_v30  ;;  %270 = vst [vmem:[%s3550_s8 + $0x7c] sm:$0xf] %v269_v31  ;;  %v271_v32 = vld [vmem:[%s3543_s7 + $0x180] sm:$0xf] }
  0x28   : > { %v273_v33 = vld [vmem:[%s3543_s7 + $0x18c] sm:$0xf]  ;;  %v275_v34 = vld [vmem:[%s3543_s7 + $0x198] sm:$0xf]  ;;  %272 = vst [vmem:[%s3550_s8 + $0x80] sm:$0xf] %v271_v32 }
  0x29   : > { %274 = vst [vmem:[%s3550_s8 + $0x84] sm:$0xf] %v273_v33  ;;  %276 = vst [vmem:[%s3550_s8 + $0x88] sm:$0xf] %v275_v34  ;;  %v277_v35 = vld [vmem:[%s3543_s7 + $0x1a4] sm:$0xf] }
  0x2a   : > { %v279_v36 = vld [vmem:[%s3543_s7 + $0x1b0] sm:$0xf]  ;;  %v281_v37 = vld [vmem:[%s3543_s7 + $0x1bc] sm:$0xf]  ;;  %278 = vst [vmem:[%s3550_s8 + $0x8c] sm:$0xf] %v277_v35 }
  0x2b   : > { %280 = vst [vmem:[%s3550_s8 + $0x90] sm:$0xf] %v279_v36  ;;  %282 = vst [vmem:[%s3550_s8 + $0x94] sm:$0xf] %v281_v37  ;;  %v283_v38 = vld [vmem:[%s3543_s7 + $0x1c8] sm:$0xf] }
  0x2c   : > { %v285_v39 = vld [vmem:[%s3543_s7 + $0x1d4] sm:$0xf]  ;;  %v287_v40 = vld [vmem:[%s3543_s7 + $0x1e0] sm:$0xf]  ;;  %284 = vst [vmem:[%s3550_s8 + $0x98] sm:$0xf] %v283_v38 }
  0x2d   : > { %286 = vst [vmem:[%s3550_s8 + $0x9c] sm:$0xf] %v285_v39  ;;  %288 = vst [vmem:[%s3550_s8 + $0xa0] sm:$0xf] %v287_v40  ;;  %v289_v41 = vld [vmem:[%s3543_s7 + $0x1ec] sm:$0xf] }
  0x2e   : > { %v291_v42 = vld [vmem:[%s3543_s7 + $0x1f8] sm:$0xf]  ;;  %v293_v43 = vld [vmem:[%s3543_s7 + $0x204] sm:$0xf]  ;;  %290 = vst [vmem:[%s3550_s8 + $0xa4] sm:$0xf] %v289_v41 }
  0x2f   : > { %292 = vst [vmem:[%s3550_s8 + $0xa8] sm:$0xf] %v291_v42  ;;  %294 = vst [vmem:[%s3550_s8 + $0xac] sm:$0xf] %v293_v43  ;;  %v295_v44 = vld [vmem:[%s3543_s7 + $0x210] sm:$0xf] }
  0x30   : > { %v297_v45 = vld [vmem:[%s3543_s7 + $0x21c] sm:$0xf]  ;;  %v299_v46 = vld [vmem:[%s3543_s7 + $0x228] sm:$0xf]  ;;  %296 = vst [vmem:[%s3550_s8 + $0xb0] sm:$0xf] %v295_v44 }
  0x31   : > { %298 = vst [vmem:[%s3550_s8 + $0xb4] sm:$0xf] %v297_v45  ;;  %300 = vst [vmem:[%s3550_s8 + $0xb8] sm:$0xf] %v299_v46  ;;  %v301_v47 = vld [vmem:[%s3543_s7 + $0x234] sm:$0xf] }
  0x32   : > { %v303_v48 = vld [vmem:[%s3543_s7 + $0x240] sm:$0xf]  ;;  %v305_v49 = vld [vmem:[%s3543_s7 + $0x24c] sm:$0xf]  ;;  %302 = vst [vmem:[%s3550_s8 + $0xbc] sm:$0xf] %v301_v47 }
  0x33   : > { %304 = vst [vmem:[%s3550_s8 + $0xc0] sm:$0xf] %v303_v48  ;;  %306 = vst [vmem:[%s3550_s8 + $0xc4] sm:$0xf] %v305_v49  ;;  %v307_v50 = vld [vmem:[%s3543_s7 + $0x258] sm:$0xf] }
  0x34   : > { %v309_v51 = vld [vmem:[%s3543_s7 + $0x264] sm:$0xf]  ;;  %v311_v52 = vld [vmem:[%s3543_s7 + $0x270] sm:$0xf]  ;;  %308 = vst [vmem:[%s3550_s8 + $0xc8] sm:$0xf] %v307_v50 }
  0x35   : > { %310 = vst [vmem:[%s3550_s8 + $0xcc] sm:$0xf] %v309_v51  ;;  %312 = vst [vmem:[%s3550_s8 + $0xd0] sm:$0xf] %v311_v52  ;;  %v313_v53 = vld [vmem:[%s3543_s7 + $0x27c] sm:$0xf] }
  0x36   : > { %v315_v54 = vld [vmem:[%s3543_s7 + $0x288] sm:$0xf]  ;;  %v317_v55 = vld [vmem:[%s3543_s7 + $0x294] sm:$0xf]  ;;  %314 = vst [vmem:[%s3550_s8 + $0xd4] sm:$0xf] %v313_v53 }
  0x37   : > { %316 = vst [vmem:[%s3550_s8 + $0xd8] sm:$0xf] %v315_v54  ;;  %318 = vst [vmem:[%s3550_s8 + $0xdc] sm:$0xf] %v317_v55  ;;  %v319_v56 = vld [vmem:[%s3543_s7 + $0x2a0] sm:$0xf] }
  0x38   : > { %v321_v57 = vld [vmem:[%s3543_s7 + $0x2ac] sm:$0xf]  ;;  %v323_v58 = vld [vmem:[%s3543_s7 + $0x2b8] sm:$0xf]  ;;  %320 = vst [vmem:[%s3550_s8 + $0xe0] sm:$0xf] %v319_v56 }
  0x39   : > { %322 = vst [vmem:[%s3550_s8 + $0xe4] sm:$0xf] %v321_v57  ;;  %324 = vst [vmem:[%s3550_s8 + $0xe8] sm:$0xf] %v323_v58  ;;  %v325_v59 = vld [vmem:[%s3543_s7 + $0x2c4] sm:$0xf] }
  0x3a   : > { %v327_v60 = vld [vmem:[%s3543_s7 + $0x2d0] sm:$0xf]  ;;  %v329_v61 = vld [vmem:[%s3543_s7 + $0x2dc] sm:$0xf]  ;;  %326 = vst [vmem:[%s3550_s8 + $0xec] sm:$0xf] %v325_v59 }
  0x3b   : > { %328 = vst [vmem:[%s3550_s8 + $0xf0] sm:$0xf] %v327_v60  ;;  %330 = vst [vmem:[%s3550_s8 + $0xf4] sm:$0xf] %v329_v61  ;;  %v331_v62 = vld [vmem:[%s3543_s7 + $0x2e8] sm:$0xf] }
  0x3c   : > { %v333_v63 = vld [vmem:[%s3543_s7 + $0x2f4] sm:$0xf]  ;;  %v335_v0 = vld [vmem:[%s3543_s7 + $0x300] sm:$0xf]  ;;  %332 = vst [vmem:[%s3550_s8 + $0xf8] sm:$0xf] %v331_v62 }
  0x3d   : > { %334 = vst [vmem:[%s3550_s8 + $0xfc] sm:$0xf] %v333_v63  ;;  %336 = vst [vmem:[%s3550_s8 + $0x100] sm:$0xf] %v335_v0  ;;  %v337_v1 = vld [vmem:[%s3543_s7 + $0x30c] sm:$0xf] }
  0x3e   : > { %v339_v2 = vld [vmem:[%s3543_s7 + $0x318] sm:$0xf]  ;;  %v341_v3 = vld [vmem:[%s3543_s7 + $0x324] sm:$0xf]  ;;  %338 = vst [vmem:[%s3550_s8 + $0x104] sm:$0xf] %v337_v1 }
  0x3f   : > { %340 = vst [vmem:[%s3550_s8 + $0x108] sm:$0xf] %v339_v2  ;;  %342 = vst [vmem:[%s3550_s8 + $0x10c] sm:$0xf] %v341_v3  ;;  %v343_v4 = vld [vmem:[%s3543_s7 + $0x330] sm:$0xf] }
  0x40   : > { %v345_v5 = vld [vmem:[%s3543_s7 + $0x33c] sm:$0xf]  ;;  %v347_v6 = vld [vmem:[%s3543_s7 + $0x348] sm:$0xf]  ;;  %344 = vst [vmem:[%s3550_s8 + $0x110] sm:$0xf] %v343_v4 }
  0x41   : > { %346 = vst [vmem:[%s3550_s8 + $0x114] sm:$0xf] %v345_v5  ;;  %348 = vst [vmem:[%s3550_s8 + $0x118] sm:$0xf] %v347_v6  ;;  %v349_v7 = vld [vmem:[%s3543_s7 + $0x354] sm:$0xf] }
  0x42   : > { %v351_v8 = vld [vmem:[%s3543_s7 + $0x360] sm:$0xf]  ;;  %v353_v9 = vld [vmem:[%s3543_s7 + $0x36c] sm:$0xf]  ;;  %350 = vst [vmem:[%s3550_s8 + $0x11c] sm:$0xf] %v349_v7 }
  0x43   : > { %352 = vst [vmem:[%s3550_s8 + $0x120] sm:$0xf] %v351_v8  ;;  %354 = vst [vmem:[%s3550_s8 + $0x124] sm:$0xf] %v353_v9  ;;  %v355_v10 = vld [vmem:[%s3543_s7 + $0x378] sm:$0xf] }
  0x44   : > { %v357_v11 = vld [vmem:[%s3543_s7 + $0x384] sm:$0xf]  ;;  %v359_v12 = vld [vmem:[%s3543_s7 + $0x390] sm:$0xf]  ;;  %356 = vst [vmem:[%s3550_s8 + $0x128] sm:$0xf] %v355_v10 }
  0x45   : > { %358 = vst [vmem:[%s3550_s8 + $0x12c] sm:$0xf] %v357_v11  ;;  %360 = vst [vmem:[%s3550_s8 + $0x130] sm:$0xf] %v359_v12  ;;  %v361_v13 = vld [vmem:[%s3543_s7 + $0x39c] sm:$0xf] }
  0x46   : > { %v363_v14 = vld [vmem:[%s3543_s7 + $0x3a8] sm:$0xf]  ;;  %v365_v15 = vld [vmem:[%s3543_s7 + $0x3b4] sm:$0xf]  ;;  %362 = vst [vmem:[%s3550_s8 + $0x134] sm:$0xf] %v361_v13 }
  0x47   : > { %364 = vst [vmem:[%s3550_s8 + $0x138] sm:$0xf] %v363_v14  ;;  %366 = vst [vmem:[%s3550_s8 + $0x13c] sm:$0xf] %v365_v15  ;;  %v367_v16 = vld [vmem:[%s3543_s7 + $0x3c0] sm:$0xf] }
  0x48   : > { %v369_v17 = vld [vmem:[%s3543_s7 + $0x3cc] sm:$0xf]  ;;  %v371_v18 = vld [vmem:[%s3543_s7 + $0x3d8] sm:$0xf]  ;;  %368 = vst [vmem:[%s3550_s8 + $0x140] sm:$0xf] %v367_v16 }
  0x49   : > { %370 = vst [vmem:[%s3550_s8 + $0x144] sm:$0xf] %v369_v17  ;;  %372 = vst [vmem:[%s3550_s8 + $0x148] sm:$0xf] %v371_v18  ;;  %v373_v19 = vld [vmem:[%s3543_s7 + $0x3e4] sm:$0xf] }
  0x4a   : > { %v375_v20 = vld [vmem:[%s3543_s7 + $0x3f0] sm:$0xf]  ;;  %v377_v21 = vld [vmem:[%s3543_s7 + $0x3fc] sm:$0xf]  ;;  %374 = vst [vmem:[%s3550_s8 + $0x14c] sm:$0xf] %v373_v19 }
  0x4b   : > { %376 = vst [vmem:[%s3550_s8 + $0x150] sm:$0xf] %v375_v20  ;;  %378 = vst [vmem:[%s3550_s8 + $0x154] sm:$0xf] %v377_v21  ;;  %v379_v22 = vld [vmem:[%s3543_s7 + $0x408] sm:$0xf] }
  0x4c   : > { %v381_v23 = vld [vmem:[%s3543_s7 + $0x414] sm:$0xf]  ;;  %v383_v24 = vld [vmem:[%s3543_s7 + $0x420] sm:$0xf]  ;;  %380 = vst [vmem:[%s3550_s8 + $0x158] sm:$0xf] %v379_v22 }
  0x4d   : > { %382 = vst [vmem:[%s3550_s8 + $0x15c] sm:$0xf] %v381_v23  ;;  %384 = vst [vmem:[%s3550_s8 + $0x160] sm:$0xf] %v383_v24  ;;  %v385_v25 = vld [vmem:[%s3543_s7 + $0x42c] sm:$0xf] }
  0x4e   : > { %v387_v26 = vld [vmem:[%s3543_s7 + $0x438] sm:$0xf]  ;;  %v389_v27 = vld [vmem:[%s3543_s7 + $0x444] sm:$0xf]  ;;  %386 = vst [vmem:[%s3550_s8 + $0x164] sm:$0xf] %v385_v25 }
  0x4f   : > { %388 = vst [vmem:[%s3550_s8 + $0x168] sm:$0xf] %v387_v26  ;;  %390 = vst [vmem:[%s3550_s8 + $0x16c] sm:$0xf] %v389_v27  ;;  %v391_v28 = vld [vmem:[%s3543_s7 + $0x450] sm:$0xf] }
  0x50   : > { %v393_v29 = vld [vmem:[%s3543_s7 + $0x45c] sm:$0xf]  ;;  %v395_v30 = vld [vmem:[%s3543_s7 + $0x468] sm:$0xf]  ;;  %392 = vst [vmem:[%s3550_s8 + $0x170] sm:$0xf] %v391_v28 }
  0x51   : > { %394 = vst [vmem:[%s3550_s8 + $0x174] sm:$0xf] %v393_v29  ;;  %396 = vst [vmem:[%s3550_s8 + $0x178] sm:$0xf] %v395_v30  ;;  %v397_v31 = vld [vmem:[%s3543_s7 + $0x474] sm:$0xf] }
  0x52   : > { %v399_v32 = vld [vmem:[%s3543_s7 + $0x480] sm:$0xf]  ;;  %v401_v33 = vld [vmem:[%s3543_s7 + $0x48c] sm:$0xf]  ;;  %398 = vst [vmem:[%s3550_s8 + $0x17c] sm:$0xf] %v397_v31 }
  0x53   : > { %400 = vst [vmem:[%s3550_s8 + $0x180] sm:$0xf] %v399_v32  ;;  %402 = vst [vmem:[%s3550_s8 + $0x184] sm:$0xf] %v401_v33  ;;  %v403_v34 = vld [vmem:[%s3543_s7 + $0x498] sm:$0xf] }
  0x54   : > { %v405_v35 = vld [vmem:[%s3543_s7 + $0x4a4] sm:$0xf]  ;;  %v407_v36 = vld [vmem:[%s3543_s7 + $0x4b0] sm:$0xf]  ;;  %404 = vst [vmem:[%s3550_s8 + $0x188] sm:$0xf] %v403_v34 }
  0x55   : > { %406 = vst [vmem:[%s3550_s8 + $0x18c] sm:$0xf] %v405_v35  ;;  %408 = vst [vmem:[%s3550_s8 + $0x190] sm:$0xf] %v407_v36  ;;  %v409_v37 = vld [vmem:[%s3543_s7 + $0x4bc] sm:$0xf] }
  0x56   : > { %v411_v38 = vld [vmem:[%s3543_s7 + $0x4c8] sm:$0xf]  ;;  %v413_v39 = vld [vmem:[%s3543_s7 + $0x4d4] sm:$0xf]  ;;  %410 = vst [vmem:[%s3550_s8 + $0x194] sm:$0xf] %v409_v37 }
  0x57   : > { %412 = vst [vmem:[%s3550_s8 + $0x198] sm:$0xf] %v411_v38  ;;  %414 = vst [vmem:[%s3550_s8 + $0x19c] sm:$0xf] %v413_v39  ;;  %v415_v40 = vld [vmem:[%s3543_s7 + $0x4e0] sm:$0xf] }
  0x58   : > { %v417_v41 = vld [vmem:[%s3543_s7 + $0x4ec] sm:$0xf]  ;;  %v419_v42 = vld [vmem:[%s3543_s7 + $0x4f8] sm:$0xf]  ;;  %416 = vst [vmem:[%s3550_s8 + $0x1a0] sm:$0xf] %v415_v40 }
  0x59   : > { %418 = vst [vmem:[%s3550_s8 + $0x1a4] sm:$0xf] %v417_v41  ;;  %420 = vst [vmem:[%s3550_s8 + $0x1a8] sm:$0xf] %v419_v42  ;;  %v421_v43 = vld [vmem:[%s3543_s7 + $0x504] sm:$0xf] }
  0x5a   : > { %v423_v44 = vld [vmem:[%s3543_s7 + $0x510] sm:$0xf]  ;;  %v425_v45 = vld [vmem:[%s3543_s7 + $0x51c] sm:$0xf]  ;;  %422 = vst [vmem:[%s3550_s8 + $0x1ac] sm:$0xf] %v421_v43 }
  0x5b   : > { %424 = vst [vmem:[%s3550_s8 + $0x1b0] sm:$0xf] %v423_v44  ;;  %426 = vst [vmem:[%s3550_s8 + $0x1b4] sm:$0xf] %v425_v45  ;;  %v427_v46 = vld [vmem:[%s3543_s7 + $0x528] sm:$0xf] }
  0x5c   : > { %v429_v47 = vld [vmem:[%s3543_s7 + $0x534] sm:$0xf]  ;;  %v431_v48 = vld [vmem:[%s3543_s7 + $0x540] sm:$0xf]  ;;  %428 = vst [vmem:[%s3550_s8 + $0x1b8] sm:$0xf] %v427_v46 }
  0x5d   : > { %430 = vst [vmem:[%s3550_s8 + $0x1bc] sm:$0xf] %v429_v47  ;;  %432 = vst [vmem:[%s3550_s8 + $0x1c0] sm:$0xf] %v431_v48  ;;  %v433_v49 = vld [vmem:[%s3543_s7 + $0x54c] sm:$0xf] }
  0x5e   : > { %v435_v50 = vld [vmem:[%s3543_s7 + $0x558] sm:$0xf]  ;;  %v437_v51 = vld [vmem:[%s3543_s7 + $0x564] sm:$0xf]  ;;  %434 = vst [vmem:[%s3550_s8 + $0x1c4] sm:$0xf] %v433_v49 }
  0x5f   : > { %436 = vst [vmem:[%s3550_s8 + $0x1c8] sm:$0xf] %v435_v50  ;;  %438 = vst [vmem:[%s3550_s8 + $0x1cc] sm:$0xf] %v437_v51  ;;  %v439_v52 = vld [vmem:[%s3543_s7 + $0x570] sm:$0xf] }
  0x60   : > { %v441_v53 = vld [vmem:[%s3543_s7 + $0x57c] sm:$0xf]  ;;  %v443_v54 = vld [vmem:[%s3543_s7 + $0x588] sm:$0xf]  ;;  %440 = vst [vmem:[%s3550_s8 + $0x1d0] sm:$0xf] %v439_v52 }
  0x61   : > { %442 = vst [vmem:[%s3550_s8 + $0x1d4] sm:$0xf] %v441_v53  ;;  %444 = vst [vmem:[%s3550_s8 + $0x1d8] sm:$0xf] %v443_v54  ;;  %v445_v55 = vld [vmem:[%s3543_s7 + $0x594] sm:$0xf] }
  0x62   : > { %v447_v56 = vld [vmem:[%s3543_s7 + $0x5a0] sm:$0xf]  ;;  %v449_v57 = vld [vmem:[%s3543_s7 + $0x5ac] sm:$0xf]  ;;  %446 = vst [vmem:[%s3550_s8 + $0x1dc] sm:$0xf] %v445_v55 }
  0x63   : > { %448 = vst [vmem:[%s3550_s8 + $0x1e0] sm:$0xf] %v447_v56  ;;  %450 = vst [vmem:[%s3550_s8 + $0x1e4] sm:$0xf] %v449_v57  ;;  %v451_v58 = vld [vmem:[%s3543_s7 + $0x5b8] sm:$0xf] }
  0x64   : > { %v453_v59 = vld [vmem:[%s3543_s7 + $0x5c4] sm:$0xf]  ;;  %v455_v60 = vld [vmem:[%s3543_s7 + $0x5d0] sm:$0xf]  ;;  %452 = vst [vmem:[%s3550_s8 + $0x1e8] sm:$0xf] %v451_v58 }
  0x65   : > { %454 = vst [vmem:[%s3550_s8 + $0x1ec] sm:$0xf] %v453_v59  ;;  %456 = vst [vmem:[%s3550_s8 + $0x1f0] sm:$0xf] %v455_v60  ;;  %v457_v61 = vld [vmem:[%s3543_s7 + $0x5dc] sm:$0xf] }
  0x66   : > { %v459_v62 = vld [vmem:[%s3543_s7 + $0x5e8] sm:$0xf]  ;;  %v461_v63 = vld [vmem:[%s3543_s7 + $0x5f4] sm:$0xf]  ;;  %458 = vst [vmem:[%s3550_s8 + $0x1f4] sm:$0xf] %v457_v61 }
  0x67   : > { %460 = vst [vmem:[%s3550_s8 + $0x1f8] sm:$0xf] %v459_v62  ;;  %462 = vst [vmem:[%s3550_s8 + $0x1fc] sm:$0xf] %v461_v63  ;;  %v463_v0 = vld [vmem:[%s3543_s7 + $0x600] sm:$0xf] }
  0x68   : > { %v465_v1 = vld [vmem:[%s3543_s7 + $0x60c] sm:$0xf]  ;;  %v467_v2 = vld [vmem:[%s3543_s7 + $0x618] sm:$0xf]  ;;  %464 = vst [vmem:[%s3550_s8 + $0x200] sm:$0xf] %v463_v0 }
  0x69   : > { %466 = vst [vmem:[%s3550_s8 + $0x204] sm:$0xf] %v465_v1  ;;  %468 = vst [vmem:[%s3550_s8 + $0x208] sm:$0xf] %v467_v2  ;;  %v469_v3 = vld [vmem:[%s3543_s7 + $0x624] sm:$0xf] }
  0x6a   : > { %v471_v4 = vld [vmem:[%s3543_s7 + $0x630] sm:$0xf]  ;;  %v473_v5 = vld [vmem:[%s3543_s7 + $0x63c] sm:$0xf]  ;;  %470 = vst [vmem:[%s3550_s8 + $0x20c] sm:$0xf] %v469_v3 }
  0x6b   : > { %472 = vst [vmem:[%s3550_s8 + $0x210] sm:$0xf] %v471_v4  ;;  %474 = vst [vmem:[%s3550_s8 + $0x214] sm:$0xf] %v473_v5  ;;  %v475_v6 = vld [vmem:[%s3543_s7 + $0x648] sm:$0xf] }
  0x6c   : > { %v477_v7 = vld [vmem:[%s3543_s7 + $0x654] sm:$0xf]  ;;  %v479_v8 = vld [vmem:[%s3543_s7 + $0x660] sm:$0xf]  ;;  %476 = vst [vmem:[%s3550_s8 + $0x218] sm:$0xf] %v475_v6 }
  0x6d   : > { %478 = vst [vmem:[%s3550_s8 + $0x21c] sm:$0xf] %v477_v7  ;;  %480 = vst [vmem:[%s3550_s8 + $0x220] sm:$0xf] %v479_v8  ;;  %v481_v9 = vld [vmem:[%s3543_s7 + $0x66c] sm:$0xf] }
  0x6e   : > { %v483_v10 = vld [vmem:[%s3543_s7 + $0x678] sm:$0xf]  ;;  %v485_v11 = vld [vmem:[%s3543_s7 + $0x684] sm:$0xf]  ;;  %482 = vst [vmem:[%s3550_s8 + $0x224] sm:$0xf] %v481_v9 }
  0x6f   : > { %484 = vst [vmem:[%s3550_s8 + $0x228] sm:$0xf] %v483_v10  ;;  %486 = vst [vmem:[%s3550_s8 + $0x22c] sm:$0xf] %v485_v11  ;;  %v487_v12 = vld [vmem:[%s3543_s7 + $0x690] sm:$0xf] }
  0x70   : > { %v489_v13 = vld [vmem:[%s3543_s7 + $0x69c] sm:$0xf]  ;;  %v491_v14 = vld [vmem:[%s3543_s7 + $0x6a8] sm:$0xf]  ;;  %488 = vst [vmem:[%s3550_s8 + $0x230] sm:$0xf] %v487_v12 }
  0x71   : > { %490 = vst [vmem:[%s3550_s8 + $0x234] sm:$0xf] %v489_v13  ;;  %492 = vst [vmem:[%s3550_s8 + $0x238] sm:$0xf] %v491_v14  ;;  %v493_v15 = vld [vmem:[%s3543_s7 + $0x6b4] sm:$0xf] }
  0x72   : > { %v495_v16 = vld [vmem:[%s3543_s7 + $0x6c0] sm:$0xf]  ;;  %v497_v17 = vld [vmem:[%s3543_s7 + $0x6cc] sm:$0xf]  ;;  %494 = vst [vmem:[%s3550_s8 + $0x23c] sm:$0xf] %v493_v15 }
  0x73   : > { %496 = vst [vmem:[%s3550_s8 + $0x240] sm:$0xf] %v495_v16  ;;  %498 = vst [vmem:[%s3550_s8 + $0x244] sm:$0xf] %v497_v17  ;;  %v499_v18 = vld [vmem:[%s3543_s7 + $0x6d8] sm:$0xf] }
  0x74   : > { %v501_v19 = vld [vmem:[%s3543_s7 + $0x6e4] sm:$0xf]  ;;  %v503_v20 = vld [vmem:[%s3543_s7 + $0x6f0] sm:$0xf]  ;;  %500 = vst [vmem:[%s3550_s8 + $0x248] sm:$0xf] %v499_v18 }
  0x75   : > { %502 = vst [vmem:[%s3550_s8 + $0x24c] sm:$0xf] %v501_v19  ;;  %504 = vst [vmem:[%s3550_s8 + $0x250] sm:$0xf] %v503_v20  ;;  %v505_v21 = vld [vmem:[%s3543_s7 + $0x6fc] sm:$0xf] }
  0x76   : > { %v507_v22 = vld [vmem:[%s3543_s7 + $0x708] sm:$0xf]  ;;  %v509_v23 = vld [vmem:[%s3543_s7 + $0x714] sm:$0xf]  ;;  %506 = vst [vmem:[%s3550_s8 + $0x254] sm:$0xf] %v505_v21 }
  0x77   : > { %508 = vst [vmem:[%s3550_s8 + $0x258] sm:$0xf] %v507_v22  ;;  %510 = vst [vmem:[%s3550_s8 + $0x25c] sm:$0xf] %v509_v23  ;;  %v511_v24 = vld [vmem:[%s3543_s7 + $0x720] sm:$0xf] }
  0x78   : > { %v513_v25 = vld [vmem:[%s3543_s7 + $0x72c] sm:$0xf]  ;;  %v515_v26 = vld [vmem:[%s3543_s7 + $0x738] sm:$0xf]  ;;  %512 = vst [vmem:[%s3550_s8 + $0x260] sm:$0xf] %v511_v24 }
  0x79   : > { %514 = vst [vmem:[%s3550_s8 + $0x264] sm:$0xf] %v513_v25  ;;  %516 = vst [vmem:[%s3550_s8 + $0x268] sm:$0xf] %v515_v26  ;;  %v517_v27 = vld [vmem:[%s3543_s7 + $0x744] sm:$0xf] }
  0x7a   : > { %v519_v28 = vld [vmem:[%s3543_s7 + $0x750] sm:$0xf]  ;;  %v521_v29 = vld [vmem:[%s3543_s7 + $0x75c] sm:$0xf]  ;;  %518 = vst [vmem:[%s3550_s8 + $0x26c] sm:$0xf] %v517_v27 }
  0x7b   : > { %520 = vst [vmem:[%s3550_s8 + $0x270] sm:$0xf] %v519_v28  ;;  %522 = vst [vmem:[%s3550_s8 + $0x274] sm:$0xf] %v521_v29  ;;  %v523_v30 = vld [vmem:[%s3543_s7 + $0x768] sm:$0xf] }
  0x7c   : > { %v525_v31 = vld [vmem:[%s3543_s7 + $0x774] sm:$0xf]  ;;  %v527_v32 = vld [vmem:[%s3543_s7 + $0x780] sm:$0xf]  ;;  %524 = vst [vmem:[%s3550_s8 + $0x278] sm:$0xf] %v523_v30 }
  0x7d   : > { %526 = vst [vmem:[%s3550_s8 + $0x27c] sm:$0xf] %v525_v31  ;;  %528 = vst [vmem:[%s3550_s8 + $0x280] sm:$0xf] %v527_v32  ;;  %v529_v33 = vld [vmem:[%s3543_s7 + $0x78c] sm:$0xf] }
  0x7e   : > { %v531_v34 = vld [vmem:[%s3543_s7 + $0x798] sm:$0xf]  ;;  %v533_v35 = vld [vmem:[%s3543_s7 + $0x7a4] sm:$0xf]  ;;  %530 = vst [vmem:[%s3550_s8 + $0x284] sm:$0xf] %v529_v33 }
  0x7f   : > { %532 = vst [vmem:[%s3550_s8 + $0x288] sm:$0xf] %v531_v34  ;;  %534 = vst [vmem:[%s3550_s8 + $0x28c] sm:$0xf] %v533_v35  ;;  %v535_v36 = vld [vmem:[%s3543_s7 + $0x7b0] sm:$0xf] }
  0x80   : > { %v537_v37 = vld [vmem:[%s3543_s7 + $0x7bc] sm:$0xf]  ;;  %v539_v38 = vld [vmem:[%s3543_s7 + $0x7c8] sm:$0xf]  ;;  %536 = vst [vmem:[%s3550_s8 + $0x290] sm:$0xf] %v535_v36 }
  0x81   : > { %538 = vst [vmem:[%s3550_s8 + $0x294] sm:$0xf] %v537_v37  ;;  %540 = vst [vmem:[%s3550_s8 + $0x298] sm:$0xf] %v539_v38  ;;  %v541_v39 = vld [vmem:[%s3543_s7 + $0x7d4] sm:$0xf] }
  0x82   : > { %v543_v40 = vld [vmem:[%s3543_s7 + $0x7e0] sm:$0xf]  ;;  %v545_v41 = vld [vmem:[%s3543_s7 + $0x7ec] sm:$0xf]  ;;  %542 = vst [vmem:[%s3550_s8 + $0x29c] sm:$0xf] %v541_v39 }
  0x83   : > { %544 = vst [vmem:[%s3550_s8 + $0x2a0] sm:$0xf] %v543_v40  ;;  %546 = vst [vmem:[%s3550_s8 + $0x2a4] sm:$0xf] %v545_v41  ;;  %v547_v42 = vld [vmem:[%s3543_s7 + $0x7f8] sm:$0xf] }
  0x84   : > { %v549_v43 = vld [vmem:[%s3543_s7 + $0x804] sm:$0xf]  ;;  %v551_v44 = vld [vmem:[%s3543_s7 + $0x810] sm:$0xf]  ;;  %548 = vst [vmem:[%s3550_s8 + $0x2a8] sm:$0xf] %v547_v42 }
  0x85   : > { %550 = vst [vmem:[%s3550_s8 + $0x2ac] sm:$0xf] %v549_v43  ;;  %552 = vst [vmem:[%s3550_s8 + $0x2b0] sm:$0xf] %v551_v44  ;;  %v553_v45 = vld [vmem:[%s3543_s7 + $0x81c] sm:$0xf] }
  0x86   : > { %v555_v46 = vld [vmem:[%s3543_s7 + $0x828] sm:$0xf]  ;;  %v557_v47 = vld [vmem:[%s3543_s7 + $0x834] sm:$0xf]  ;;  %554 = vst [vmem:[%s3550_s8 + $0x2b4] sm:$0xf] %v553_v45 }
  0x87   : > { %556 = vst [vmem:[%s3550_s8 + $0x2b8] sm:$0xf] %v555_v46  ;;  %558 = vst [vmem:[%s3550_s8 + $0x2bc] sm:$0xf] %v557_v47  ;;  %v559_v48 = vld [vmem:[%s3543_s7 + $0x840] sm:$0xf] }
  0x88   : > { %v561_v49 = vld [vmem:[%s3543_s7 + $0x84c] sm:$0xf]  ;;  %v563_v50 = vld [vmem:[%s3543_s7 + $0x858] sm:$0xf]  ;;  %560 = vst [vmem:[%s3550_s8 + $0x2c0] sm:$0xf] %v559_v48 }
  0x89   : > { %562 = vst [vmem:[%s3550_s8 + $0x2c4] sm:$0xf] %v561_v49  ;;  %564 = vst [vmem:[%s3550_s8 + $0x2c8] sm:$0xf] %v563_v50  ;;  %v565_v51 = vld [vmem:[%s3543_s7 + $0x864] sm:$0xf] }
  0x8a   : > { %v567_v52 = vld [vmem:[%s3543_s7 + $0x870] sm:$0xf]  ;;  %v569_v53 = vld [vmem:[%s3543_s7 + $0x87c] sm:$0xf]  ;;  %566 = vst [vmem:[%s3550_s8 + $0x2cc] sm:$0xf] %v565_v51 }
  0x8b   : > { %568 = vst [vmem:[%s3550_s8 + $0x2d0] sm:$0xf] %v567_v52  ;;  %570 = vst [vmem:[%s3550_s8 + $0x2d4] sm:$0xf] %v569_v53  ;;  %v571_v54 = vld [vmem:[%s3543_s7 + $0x888] sm:$0xf] }
  0x8c   : > { %v573_v55 = vld [vmem:[%s3543_s7 + $0x894] sm:$0xf]  ;;  %v575_v56 = vld [vmem:[%s3543_s7 + $0x8a0] sm:$0xf]  ;;  %572 = vst [vmem:[%s3550_s8 + $0x2d8] sm:$0xf] %v571_v54 }
  0x8d   : > { %574 = vst [vmem:[%s3550_s8 + $0x2dc] sm:$0xf] %v573_v55  ;;  %576 = vst [vmem:[%s3550_s8 + $0x2e0] sm:$0xf] %v575_v56  ;;  %v577_v57 = vld [vmem:[%s3543_s7 + $0x8ac] sm:$0xf] }
  0x8e   : > { %v579_v58 = vld [vmem:[%s3543_s7 + $0x8b8] sm:$0xf]  ;;  %v581_v59 = vld [vmem:[%s3543_s7 + $0x8c4] sm:$0xf]  ;;  %578 = vst [vmem:[%s3550_s8 + $0x2e4] sm:$0xf] %v577_v57 }
  0x8f   : > { %580 = vst [vmem:[%s3550_s8 + $0x2e8] sm:$0xf] %v579_v58  ;;  %582 = vst [vmem:[%s3550_s8 + $0x2ec] sm:$0xf] %v581_v59  ;;  %v583_v60 = vld [vmem:[%s3543_s7 + $0x8d0] sm:$0xf] }
  0x90   : > { %v585_v61 = vld [vmem:[%s3543_s7 + $0x8dc] sm:$0xf]  ;;  %v587_v62 = vld [vmem:[%s3543_s7 + $0x8e8] sm:$0xf]  ;;  %584 = vst [vmem:[%s3550_s8 + $0x2f0] sm:$0xf] %v583_v60 }
  0x91   : > { %586 = vst [vmem:[%s3550_s8 + $0x2f4] sm:$0xf] %v585_v61  ;;  %588 = vst [vmem:[%s3550_s8 + $0x2f8] sm:$0xf] %v587_v62  ;;  %v589_v63 = vld [vmem:[%s3543_s7 + $0x8f4] sm:$0xf] }
  0x92   : > { %v591_v0 = vld [vmem:[%s3543_s7 + $0x900] sm:$0xf]  ;;  %v593_v1 = vld [vmem:[%s3543_s7 + $0x90c] sm:$0xf]  ;;  %590 = vst [vmem:[%s3550_s8 + $0x2fc] sm:$0xf] %v589_v63 }
  0x93   : > { %592 = vst [vmem:[%s3550_s8 + $0x300] sm:$0xf] %v591_v0  ;;  %594 = vst [vmem:[%s3550_s8 + $0x304] sm:$0xf] %v593_v1  ;;  %v595_v2 = vld [vmem:[%s3543_s7 + $0x918] sm:$0xf] }
  0x94   : > { %v597_v3 = vld [vmem:[%s3543_s7 + $0x924] sm:$0xf]  ;;  %v599_v4 = vld [vmem:[%s3543_s7 + $0x930] sm:$0xf]  ;;  %596 = vst [vmem:[%s3550_s8 + $0x308] sm:$0xf] %v595_v2 }
  0x95   : > { %598 = vst [vmem:[%s3550_s8 + $0x30c] sm:$0xf] %v597_v3  ;;  %600 = vst [vmem:[%s3550_s8 + $0x310] sm:$0xf] %v599_v4  ;;  %v601_v5 = vld [vmem:[%s3543_s7 + $0x93c] sm:$0xf] }
  0x96   : > { %v603_v6 = vld [vmem:[%s3543_s7 + $0x948] sm:$0xf]  ;;  %v605_v7 = vld [vmem:[%s3543_s7 + $0x954] sm:$0xf]  ;;  %602 = vst [vmem:[%s3550_s8 + $0x314] sm:$0xf] %v601_v5 }
  0x97   : > { %604 = vst [vmem:[%s3550_s8 + $0x318] sm:$0xf] %v603_v6  ;;  %606 = vst [vmem:[%s3550_s8 + $0x31c] sm:$0xf] %v605_v7  ;;  %v607_v8 = vld [vmem:[%s3543_s7 + $0x960] sm:$0xf] }
  0x98   : > { %v609_v9 = vld [vmem:[%s3543_s7 + $0x96c] sm:$0xf]  ;;  %v611_v10 = vld [vmem:[%s3543_s7 + $0x978] sm:$0xf]  ;;  %608 = vst [vmem:[%s3550_s8 + $0x320] sm:$0xf] %v607_v8 }
  0x99   : > { %610 = vst [vmem:[%s3550_s8 + $0x324] sm:$0xf] %v609_v9  ;;  %612 = vst [vmem:[%s3550_s8 + $0x328] sm:$0xf] %v611_v10  ;;  %v613_v11 = vld [vmem:[%s3543_s7 + $0x984] sm:$0xf] }
  0x9a   : > { %614 = vst [vmem:[%s3550_s8 + $0x32c] sm:$0xf] %v613_v11 }
  0x9b PF: > { %p2925_p7 = scmp.ge.s32.totalorder %s3470_s20, 1  ;;  %p1057_p8 = scmp.lt.s32.totalorder %s3470_s20, 4 }
  0x9d   : > { %p1058_p9 = pnand %p2925_p7, %p1057_p8 }
  0x9f   : > { %1061 = sbr.rel (%p1058_p9) target bundleno = 593 (0x251), region = 77 }
  0xa4   : > { %s1064_s9 = sand.u32 1, %s3462_s18   ;;  %v1402_v12 = vlaneseq  ;;  %v1308_v14 = vld [vmem:[%s4622_s0 + $0x8] sm:$0xff]  ;;  %v1321_v15 = vld [vmem:[%s4622_s0 + $0x70] sm:$0xff]  ;;  %v3971_v16 = vld [vmem:[%s4623_s1] sm:$0xff]  ;;  %vm2222_vm0 = vcmask 785408   ;;  %vm2695_vm1 = vcmask 1040384  }
  0xa5   : > { %s3318_s10 = smul.u32 816, %s1064_s9  ;;  %v1310_v19 = vld [vmem:[%s4622_s0 + $0x18] sm:$0xff]  ;;  %v1323_v20 = vld [vmem:[%s4622_s0 + $0x80] sm:$0xff]  ;;  %v1320_v63 = vld [vmem:[%s4622_s0 + $0x68] sm:$0xff]  ;;  %p1096_p10 = scmp.lt.s32.totalorder %s3518_s21, 2 }
  0xa6   : > { %v3960_v13 = vshrl.u32 %v1402_v12, 7  ;;  %v1307_v62 = vld [vmem:[%s4622_s0] sm:$0xff]  ;;  %v1309_v2 = vld [vmem:[%s4622_s0 + $0x10] sm:$0xff]  ;;  %v1322_v3 = vld [vmem:[%s4622_s0 + $0x78] sm:$0xff]  ;;  %s3319_s8 = smul.u32 56, %s1064_s9  ;;  %s3032_s16 = sshll.u32 (%p3533_p5), %s3518_s21, 3 }
  0xa7   : > { %s3973_s17 = scalar_lea.vmem [#allocation2], %s3318_s10  ;;  %v1334_v6 = vld [vmem:[%s4622_s0 + $0xd8] sm:$0xff]  ;;  %v1347_v7 = vld [vmem:[%s4622_s0 + $0x140] sm:$0xff]  ;;  %s2788_s24 = scalar_lea.vmem (%p3533_p5), %s4627_s5, %s3032_s16 }
  0xa8   : > { %v3344_v17 = vld [vmem:[%s3973_s17 + $0x78] sm:$0xff]   ;;  %v1408_v18 = vsub.s32 1, %v3960_v13  ;;  %v1416_v22 = vsub.s32 3, %v3960_v13  ;;  %v3348_v27 = vld [vmem:[%s3973_s17 + $0x70] sm:$0xff]   ;;  %v1424_v37 = vsub.s32 5, %v3960_v13  ;;  %v3352_v38 = vld [vmem:[%s3973_s17 + $0x68] sm:$0xff]  }
  0xa9   : > { %v3345_v21 = vld [vmem:[%s3973_s17 + $0xf8] sm:$0xff]   ;;  %3035 = vmatprep.subr.bf16.mxu0 %v3344_v17  ;;  %v3349_v30 = vld [vmem:[%s3973_s17 + $0xf0] sm:$0xff]   ;;  %v1432_v39 = vsub.s32 7, %v3960_v13  ;;  %v3353_v40 = vld [vmem:[%s3973_s17 + $0xe8] sm:$0xff]   ;;  %v1420_v42 = vsub.s32 4, %v3960_v13  ;;  %v1428_v45 = vsub.s32 6, %v3960_v13 }
  0xaa   : > { %v3346_v23 = vld [vmem:[%s3973_s17 + $0x38] sm:$0xff]   ;;  %v3989_v24 = vrot.slane %v3971_v16, %v1408_v18  ;;  %3075 = vmatprep.subr.bf16.mxu1 %v3345_v21  ;;  %v3995_v26 = vrot.slane %v3971_v16, %v1416_v22  ;;  %v3350_v33 = vld [vmem:[%s3973_s17 + $0x30] sm:$0xff]   ;;  %v4010_v41 = vrot.slane %v3971_v16, %v1424_v37  ;;  %v3354_v43 = vld [vmem:[%s3973_s17 + $0x28] sm:$0xff]   ;;  %v4036_v57 = vsub.s32 0, %v3960_v13  ;;  %s4545_s18 = scalar_lea.vmem [#allocation3], %s3319_s8 }
  0xab   : > { %v3347_v25 = vld [vmem:[%s3973_s17 + $0xb8] sm:$0xff]   ;;  %3036 = vmatpush3.bf16.msra.mxu0 %v3346_v23  ;;  %v3351_v35 = vld [vmem:[%s3973_s17 + $0xb0] sm:$0xff]   ;;  %v4015_v44 = vrot.slane %v3971_v16, %v1432_v39  ;;  %v3355_v46 = vld [vmem:[%s3973_s17 + $0xa8] sm:$0xff]   ;;  %v4022_v47 = vrot.slane %v3971_v16, %v1420_v42  ;;  %v4026_v49 = vrot.slane %v3971_v16, %v1428_v45  ;;  %v1412_v59 = vsub.s32 2, %v3960_v13  ;;  %s1097_s9 = scalar_select %p1096_p10, %s3518_s21, 2 }
  0xac   : > { %v1468_v28 = vmul.f32 %v3989_v24, %v1308_v14  ;;  %v1481_v29 = vmul.f32 %v3989_v24, %v1321_v15  ;;  %3076 = vmatpush3.bf16.msra.mxu1 %v3347_v25  ;;  %v1470_v31 = vmul.f32 %v3995_v26, %v1310_v19  ;;  %v1483_v32 = vmul.f32 %v3995_v26, %v1323_v20  ;;  %v3356_v48 = vld [vmem:[%s3973_s17 + $0x60] sm:$0xff]   ;;  %v3360_v53 = vld [vmem:[%s3973_s17 + $0x58] sm:$0xff]   ;;  %v3364_v58 = vld [vmem:[%s3973_s17 + $0x50] sm:$0xff]  }
  0xad   : > { %3037 = vmatprep.subr.bf16.mxu0 %v3348_v27  ;;  %3077 = vmatprep.subr.bf16.mxu1 %v3349_v30  ;;  %v3357_v50 = vld [vmem:[%s3973_s17 + $0xe0] sm:$0xff]   ;;  %v3361_v54 = vld [vmem:[%s3973_s17 + $0xd8] sm:$0xff]   ;;  %4631 = vst [vmem:[#allocation4_spill] sm:$0xff] %v4036_v57  ;;  %v3365_v60 = vld [vmem:[%s3973_s17 + $0xd0] sm:$0xff]   ;;  %v4051_v1 = vrot.slane %v3971_v16, %v4036_v57  ;;  %v4063_v5 = vrot.slane %v3971_v16, %v1412_v59  ;;  %s1098_s12 = scalar_lea.vmem %s4625_s3, %s1097_s9  ;;  %s1101_s15 = scalar_lea.vmem %s4626_s4, %s1097_s9 }
  0xae   : > { %v1559_v34 = vpack.c.bf16 %v1481_v29, %v1468_v28  ;;  %v1561_v36 = vpack.c.bf16 %v1483_v32, %v1470_v31  ;;  %v3358_v51 = vld [vmem:[%s3973_s17 + $0x20] sm:$0xff]   ;;  %v3362_v55 = vld [vmem:[%s3973_s17 + $0x18] sm:$0xff]   ;;  %v3366_v61 = vld [vmem:[%s3973_s17 + $0x10] sm:$0xff]   ;;  %v1494_v19 = vmul.f32 %v3989_v24, %v1334_v6  ;;  %v1507_v20 = vmul.f32 %v3989_v24, %v1347_v7 }
  0xaf   : > { %3038 = vmatpush3.bf16.msra.mxu0 %v3350_v33  ;;  %v3359_v52 = vld [vmem:[%s3973_s17 + $0xa0] sm:$0xff]   ;;  %v3363_v56 = vld [vmem:[%s3973_s17 + $0x98] sm:$0xff]   ;;  %v3367_v0 = vld [vmem:[%s3973_s17 + $0x90] sm:$0xff]   ;;  %v1467_v11 = vmul.f32 %v4051_v1, %v1307_v62  ;;  %v1480_v12 = vmul.f32 %v4051_v1, %v1320_v63  ;;  %v1469_v15 = vmul.f32 %v4063_v5, %v1309_v2  ;;  %v1482_v16 = vmul.f32 %v4063_v5, %v1322_v3 }
  0xb0   : > { %2267 = vmatprep.mubr.bf16.mxu0 %v1559_v34  ;;  %3078 = vmatpush3.bf16.msra.mxu1 %v3351_v35  ;;  %v3368_v4 = vld [vmem:[%s3973_s17 + $0x48] sm:$0xff]   ;;  %v3372_v14 = vld [vmem:[%s3973_s17 + $0x40] sm:$0xff]   ;;  %v3376_v28 = vld [vmem:[%s3973_s17 + $0x178] sm:$0xff]   ;;  %v1572_v30 = vpack.c.bf16 %v1507_v20, %v1494_v19 }
  0xb1   : > { %2331 = vmatprep.mubr.bf16.mxu1 %v1561_v36  ;;  %3039 = vmatprep.subr.bf16.mxu0 %v3352_v38  ;;  %v3369_v8 = vld [vmem:[%s3973_s17 + $0xc8] sm:$0xff]   ;;  %v3373_v17 = vld [vmem:[%s3973_s17 + $0xc0] sm:$0xff]   ;;  %v1558_v25 = vpack.c.bf16 %v1480_v12, %v1467_v11  ;;  %v1560_v27 = vpack.c.bf16 %v1482_v16, %v1469_v15  ;;  %v3377_v29 = vld [vmem:[%s3973_s17 + $0x1f8] sm:$0xff]  }
  0xb2   : > { %3079 = vmatprep.subr.bf16.mxu1 %v3353_v40  ;;  %v3370_v9 = vld [vmem:[%s3973_s17 + $0x8] sm:$0xff]   ;;  %v3374_v21 = vld [vmem:[%s3973_s17] sm:$0xff]   ;;  %v3378_v31 = vld [vmem:[%s3973_s17 + $0x138] sm:$0xff]  }
  0xb3   : > { %3040 = vmatpush3.bf16.msra.mxu0 %v3354_v43  ;;  %v3371_v10 = vld [vmem:[%s3973_s17 + $0x88] sm:$0xff]   ;;  %v3375_v23 = vld [vmem:[%s3973_s17 + $0x80] sm:$0xff]   ;;  %v3379_v32 = vld [vmem:[%s3973_s17 + $0x1b8] sm:$0xff]  }
  0xb4   : > { %3080 = vmatpush3.bf16.msra.mxu1 %v3355_v46  ;;  %3041 = vmatprep.subr.bf16.mxu0 %v3356_v48  ;;  %v3380_v33 = vld [vmem:[%s3973_s17 + $0x170] sm:$0xff]   ;;  %v1336_v37 = vld [vmem:[%s4622_s0 + $0xe8] sm:$0xff]  ;;  %v1346_v45 = vld [vmem:[%s4622_s0 + $0x138] sm:$0xff] }
  0xb5   : > { %3081 = vmatprep.subr.bf16.mxu1 %v3357_v50  ;;  %v3381_v34 = vld [vmem:[%s3973_s17 + $0x1f0] sm:$0xff]   ;;  %v1496_v40 = vmul.f32 %v3995_v26, %v1336_v37  ;;  %v1348_v50 = vld [vmem:[%s4622_s0 + $0x148] sm:$0xff]  ;;  %v3388_v63 = vld [vmem:[%s3973_s17 + $0x160] sm:$0xff]  }
  0xb6   : > { %v3382_v35 = vld [vmem:[%s3973_s17 + $0x130] sm:$0xff]   ;;  %v3387_v62 = vld [vmem:[%s3973_s17 + $0x1a8] sm:$0xff]   ;;  %v3390_v2 = vld [vmem:[%s3973_s17 + $0x120] sm:$0xff]  }
  0xb7   : > { %3042 = vmatpush3.bf16.msra.mxu0 %v3358_v51  ;;  %v3383_v36 = vld [vmem:[%s3973_s17 + $0x1b0] sm:$0xff]   ;;  %v1506_v51 = vmul.f32 %v4051_v1, %v1346_v45  ;;  %v3391_v3 = vld [vmem:[%s3973_s17 + $0x1a0] sm:$0xff]   ;;  %v1362_v7 = vld [vmem:[%s4622_s0 + $0x1b8] sm:$0xff] }
  0xb8   : > { %3082 = vmatpush3.bf16.msra.mxu1 %v3359_v52  ;;  %3043 = vmatprep.subr.bf16.mxu0 %v3360_v53  ;;  %v1349_v38 = vld [vmem:[%s4622_s0 + $0x150] sm:$0xff]  ;;  %v1335_v48 = vld [vmem:[%s4622_s0 + $0xe0] sm:$0xff]  ;;  %v1508_v53 = vmul.f32 %v4063_v5, %v1348_v50  ;;  %v1522_v11 = vmul.f32 %v3995_v26, %v1362_v7  ;;  %v1374_v20 = vld [vmem:[%s4622_s0 + $0x218] sm:$0xff] }
  0xb9   : > { %3083 = vmatprep.subr.bf16.mxu1 %v3361_v54  ;;  %v1333_v39 = vld [vmem:[%s4622_s0 + $0xd0] sm:$0xff]  ;;  %v1509_v43 = vmul.f32 %v3995_v26, %v1349_v38  ;;  %v1495_v52 = vmul.f32 %v4063_v5, %v1335_v48  ;;  %v3384_v54 = vld [vmem:[%s3973_s17 + $0x168] sm:$0xff]   ;;  %v1359_v12 = vld [vmem:[%s4622_s0 + $0x1a0] sm:$0xff] }
  0xba   : > { %v1493_v46 = vmul.f32 %v4051_v1, %v1333_v39  ;;  %v1373_v6 = vld [vmem:[%s4622_s0 + $0x210] sm:$0xff]  ;;  %v1519_v16 = vmul.f32 %v4051_v1, %v1359_v12  ;;  %v1386_v38 = vld [vmem:[%s4622_s0 + $0x278] sm:$0x1]  ;;  %v1387_v45 = vld [vmem:[%s4622_s0 + $0x280] sm:$0x1] }
  0xbb   : > { %3044 = vmatpush3.bf16.msra.mxu0 %v3362_v55  ;;  %v1574_v55 = vpack.c.bf16 %v1509_v43, %v1496_v40  ;;  %v1361_v19 = vld [vmem:[%s4622_s0 + $0x1b0] sm:$0xff]  ;;  %v1546_v39 = vmul.f32 %v3989_v24, %v1386_v38  ;;  %v1388_v40 = vld [vmem:[%s4622_s0 + $0x288] sm:$0x1]  ;;  %v1547_v48 = vmul.f32 %v4063_v5, %v1387_v45  ;;  %v1326_v12 = vld [vmem:[%s4622_s0 + $0x98] sm:$0xff] }
  0xbc   : > { %3084 = vmatpush3.bf16.msra.mxu1 %v3363_v56  ;;  %3045 = vmatprep.subr.bf16.mxu0 %v3364_v58  ;;  %v3385_v56 = vld [vmem:[%s3973_s17 + $0x1e8] sm:$0xff]   ;;  %v1571_v58 = vpack.c.bf16 %v1506_v51, %v1493_v46  ;;  %v3399_v37 = vld [vmem:[%s3973_s17 + $0x190] sm:$0xff]   ;;  %v1548_v46 = vmul.f32 %v3995_v26, %v1388_v40 }
  0xbd   : > { %3085 = vmatprep.subr.bf16.mxu1 %v3365_v60  ;;  %v1573_v60 = vpack.c.bf16 %v1508_v53, %v1495_v52  ;;  %v1385_v43 = vld [vmem:[%s4622_s0 + $0x270] sm:$0x1]  ;;  %v3400_v50 = vld [vmem:[%s3973_s17 + $0x148] sm:$0xff]   ;;  %v1598_v51 = vpack.c.bf16 %v1546_v39, %v1546_v39  ;;  %v1339_v45 = vld [vmem:[%s4622_s0 + $0x100] sm:$0xff] }
  0xbe   : > { %v3401_v52 = vld [vmem:[%s3973_s17 + $0x1c8] sm:$0xff]   ;;  %v1600_v53 = vpack.c.bf16 %v1548_v46, %v1548_v46  ;;  %v1337_v40 = vld [vmem:[%s4622_s0 + $0xf0] sm:$0xff] }
  0xbf   : > { %3046 = vmatpush3.bf16.msra.mxu0 %v3366_v61  ;;  %v3386_v61 = vld [vmem:[%s3973_s17 + $0x128] sm:$0xff]   ;;  %v1497_v46 = vmul.f32 %v4022_v47, %v1337_v40 }
  0xc0   : > { %3086 = vmatpush3.bf16.msra.mxu1 %v3367_v0  ;;  %3047 = vmatprep.subr.bf16.mxu0 %v3368_v4  ;;  %v3389_v0 = vld [vmem:[%s3973_s17 + $0x1e0] sm:$0xff]   ;;  %v1360_v4 = vld [vmem:[%s4622_s0 + $0x1a8] sm:$0xff] }
  0xc1   : > { %3087 = vmatprep.subr.bf16.mxu1 %v3369_v8  ;;  %v1520_v8 = vmul.f32 %v3989_v24, %v1360_v4  ;;  %v1324_v7 = vld [vmem:[%s4622_s0 + $0x88] sm:$0xff] }
  0xc2   : > { %v1332_v13 = vld [vmem:[%s4622_s0 + $0xc8] sm:$0xff] }
  0xc3   : > { %3048 = vmatpush3.bf16.msra.mxu0 %v3370_v9  ;;  %v1533_v9 = vmul.f32 %v3989_v24, %v1373_v6  ;;  %v1545_v24 = vmul.f32 %v4051_v1, %v1385_v43  ;;  %v1311_v6 = vld [vmem:[%s4622_s0 + $0x20] sm:$0xff]  ;;  %v1350_v43 = vld [vmem:[%s4622_s0 + $0x158] sm:$0xff] }
  0xc4   : > { %3088 = vmatpush3.bf16.msra.mxu1 %v3371_v10  ;;  %3049 = vmatprep.subr.bf16.mxu0 %v3372_v14  ;;  %v1375_v10 = vld [vmem:[%s4622_s0 + $0x220] sm:$0xff]  ;;  %v1372_v14 = vld [vmem:[%s4622_s0 + $0x208] sm:$0xff] }
  0xc5   : > { %3089 = vmatprep.subr.bf16.mxu1 %v3373_v17  ;;  %v1535_v15 = vmul.f32 %v3995_v26, %v1375_v10  ;;  %v1532_v17 = vmul.f32 %v4051_v1, %v1372_v14  ;;  %v3404_v26 = vld [vmem:[%s3973_s17 + $0x140] sm:$0xff]   ;;  %v1484_v10 = vmul.f32 %v4022_v47, %v1324_v7 }
  0xc6   : > { %v3405_v1 = vld [vmem:[%s3973_s17 + $0x1c0] sm:$0xff]  }
  0xc7   : > { %3050 = vmatpush3.bf16.msra.mxu0 %v3374_v21  ;;  %v1585_v21 = vpack.c.bf16 %v1533_v9, %v1520_v8  ;;  %v1471_v9 = vmul.f32 %v4022_v47, %v1311_v6  ;;  %v1379_v6 = vld [vmem:[%s4622_s0 + $0x240] sm:$0xff] }
  0xc8   : > { %3090 = vmatpush3.bf16.msra.mxu1 %v3375_v23  ;;  %3115 = vmatprep.subr.bf16.mxu0 %v3376_v28  ;;  %v1521_v23 = vmul.f32 %v4063_v5, %v1361_v19  ;;  %v1587_v28 = vpack.c.bf16 %v1535_v15, %v1522_v11  ;;  %v1313_v11 = vld [vmem:[%s4622_s0 + $0x30] sm:$0xff]  ;;  %v1363_v7 = vld [vmem:[%s4622_s0 + $0x1c0] sm:$0xff] }
  0xc9   : > { %3155 = vmatprep.subr.bf16.mxu1 %v3377_v29  ;;  %v1584_v29 = vpack.c.bf16 %v1532_v17, %v1519_v16  ;;  %v1473_v15 = vmul.f32 %v4026_v49, %v1313_v11  ;;  %v1486_v16 = vmul.f32 %v4026_v49, %v1326_v12  ;;  %v3408_v17 = vld [vmem:[%s3973_s17 + $0x278] sm:$0xff]   ;;  %v1523_v11 = vmul.f32 %v4022_v47, %v1363_v7  ;;  %v1365_v12 = vld [vmem:[%s4622_s0 + $0x1d0] sm:$0xff] }
  0xca   : > { %2268 = vmatmul.mubr.bf16.vlgmr.msra.gmra.mxu0 %v1558_v25  ;;  %v1534_v25 = vmul.f32 %v4063_v5, %v1374_v20  ;;  %v3406_v5 = vld [vmem:[%s3973_s17 + $0x100] sm:$0xff]   ;;  %v1562_v20 = vpack.c.bf16 %v1484_v10, %v1471_v9  ;;  %v1539_v9 = vmul.f32 %v4015_v44, %v1379_v6  ;;  %v1376_v10 = vld [vmem:[%s4622_s0 + $0x228] sm:$0xff] }
  0xcb   : > { %2332 = vmatmul.mubr.bf16.vlgmr.msra.gmra.mxu1 %v1560_v27  ;;  %3116 = vmatpush3.bf16.msra.mxu0 %v3378_v31  ;;  %v3392_v27 = vld [vmem:[%s3973_s17 + $0x158] sm:$0xff]  }
  0xcc   : > { %3156 = vmatpush3.bf16.msra.mxu1 %v3379_v32  ;;  %2275 = vmatprep.mubr.bf16.mxu0 %v1572_v30  ;;  %v3393_v30 = vld [vmem:[%s3973_s17 + $0x1d8] sm:$0xff]   ;;  %v1586_v31 = vpack.c.bf16 %v1534_v25, %v1521_v23  ;;  %v1564_v23 = vpack.c.bf16 %v1486_v16, %v1473_v15  ;;  %v1536_v16 = vmul.f32 %v4022_v47, %v1376_v10  ;;  %v3440_v10 = vld [vmem:[%s3973_s17 + $0x328] sm:$0xff]  }
  0xcd   : > { %3117 = vmatprep.subr.bf16.mxu0 %v3380_v33  ;;  %3157 = vmatprep.subr.bf16.mxu1 %v3381_v34  ;;  %v3394_v32 = vld [vmem:[%s3973_s17 + $0x118] sm:$0xff]   ;;  %v3396_v34 = vld [vmem:[%s3973_s17 + $0x150] sm:$0xff]  }
  0xce   : > { %2339 = vmatprep.mubr.bf16.mxu1 %v1574_v55  ;;  %v3395_v33 = vld [vmem:[%s3973_s17 + $0x198] sm:$0xff]   ;;  %v1599_v55 = vpack.c.bf16 %v1547_v48, %v1547_v48 }
  0xcf   : > { %3118 = vmatpush3.bf16.msra.mxu0 %v3382_v35  ;;  %v3397_v35 = vld [vmem:[%s3973_s17 + $0x1d0] sm:$0xff]   ;;  %v3410_v25 = vld [vmem:[%s3973_s17 + $0x238] sm:$0xff]  }
  0xd0   : > { %3158 = vmatpush3.bf16.msra.mxu1 %v3383_v36  ;;  %3119 = vmatprep.subr.bf16.mxu0 %v3384_v54  ;;  %v3398_v36 = vld [vmem:[%s3973_s17 + $0x110] sm:$0xff]   ;;  %v1597_v54 = vpack.c.bf16 %v1545_v24, %v1545_v24  ;;  %v1510_v24 = vmul.f32 %v4022_v47, %v1350_v43  ;;  %v1352_v48 = vld [vmem:[%s4622_s0 + $0x168] sm:$0xff] }
  0xd1   : > { %3159 = vmatprep.subr.bf16.mxu1 %v3385_v56  ;;  %v3402_v56 = vld [vmem:[%s3973_s17 + $0x108] sm:$0xff]   ;;  %v1391_v43 = vld [vmem:[%s4622_s0 + $0x2a0] sm:$0x1] }
  0xd2   : > { %2276 = vmatmul.mubr.bf16.gmra.mxu0 %v1571_v58  ;;  %v3403_v58 = vld [vmem:[%s3973_s17 + $0x188] sm:$0xff]  }
  0xd3   : > { %2340 = vmatmul.mubr.bf16.gmra.mxu1 %v1573_v60  ;;  %3120 = vmatpush3.bf16.msra.mxu0 %v3386_v61  ;;  %v3407_v60 = vld [vmem:[%s3973_s17 + $0x180] sm:$0xff]   ;;  %v1312_v61 = vld [vmem:[%s4622_s0 + $0x28] sm:$0xff] }
  0xd4   : > { %3160 = vmatpush3.bf16.msra.mxu1 %v3387_v62  ;;  %3121 = vmatprep.subr.bf16.mxu0 %v3388_v63  ;;  %v1325_v62 = vld [vmem:[%s4622_s0 + $0x90] sm:$0xff]  ;;  %v1314_v63 = vld [vmem:[%s4622_s0 + $0x38] sm:$0xff] }
  0xd5   : > { %3161 = vmatprep.subr.bf16.mxu1 %v3389_v0  ;;  %2283 = vmatprep.mubr.bf16.mxu0 %v1585_v21  ;;  %v1472_v0 = vmul.f32 %v4010_v41, %v1312_v61  ;;  %v1474_v4 = vmul.f32 %v4015_v44, %v1314_v63  ;;  %v3409_v21 = vld [vmem:[%s3973_s17 + $0x2f8] sm:$0xff]   ;;  %v3422_v61 = vld [vmem:[%s3973_s17 + $0x220] sm:$0xff]  }
  0xd6   : > { %2347 = vmatprep.mubr.bf16.mxu1 %v1587_v28  ;;  %v3412_v28 = vld [vmem:[%s3973_s17 + $0x270] sm:$0xff]   ;;  %v1364_v63 = vld [vmem:[%s4622_s0 + $0x1c8] sm:$0xff] }
  0xd7   : > { %3122 = vmatpush3.bf16.msra.mxu0 %v3390_v2  ;;  %v1485_v2 = vmul.f32 %v4010_v41, %v1325_v62  ;;  %v3423_v62 = vld [vmem:[%s3973_s17 + $0x2a0] sm:$0xff]  }
  0xd8   : > { %3162 = vmatpush3.bf16.msra.mxu1 %v3391_v3  ;;  %3123 = vmatprep.subr.bf16.mxu0 %v3392_v27  ;;  %v1327_v3 = vld [vmem:[%s4622_s0 + $0xa0] sm:$0xff]  ;;  %v3411_v27 = vld [vmem:[%s3973_s17 + $0x2b8] sm:$0xff]  }
  0xd9   : > { %3163 = vmatprep.subr.bf16.mxu1 %v3393_v30  ;;  %v1487_v8 = vmul.f32 %v4015_v44, %v1327_v3  ;;  %v1563_v14 = vpack.c.bf16 %v1485_v2, %v1472_v0  ;;  %v3414_v30 = vld [vmem:[%s3973_s17 + $0x230] sm:$0xff]   ;;  %v1524_v2 = vmul.f32 %v4010_v41, %v1364_v63 }
  0xda   : > { %2284 = vmatmul.mubr.bf16.gmra.mxu0 %v1584_v29  ;;  %v3413_v29 = vld [vmem:[%s3973_s17 + $0x2f0] sm:$0xff]  }
  0xdb   : > { %2348 = vmatmul.mubr.bf16.gmra.mxu1 %v1586_v31  ;;  %3124 = vmatpush3.bf16.msra.mxu0 %v3394_v32  ;;  %v1565_v19 = vpack.c.bf16 %v1487_v8, %v1474_v4  ;;  %v3415_v31 = vld [vmem:[%s3973_s17 + $0x2b0] sm:$0xff]   ;;  %v1338_v32 = vld [vmem:[%s4622_s0 + $0xf8] sm:$0xff] }
  0xdc   : > { %3164 = vmatpush3.bf16.msra.mxu1 %v3395_v33  ;;  %3125 = vmatprep.subr.bf16.mxu0 %v3396_v34  ;;  %v1351_v33 = vld [vmem:[%s4622_s0 + $0x160] sm:$0xff]  ;;  %v1498_v34 = vmul.f32 %v4010_v41, %v1338_v32  ;;  %v1377_v0 = vld [vmem:[%s4622_s0 + $0x230] sm:$0xff]  ;;  %v1366_v4 = vld [vmem:[%s4622_s0 + $0x1d8] sm:$0xff] }
  0xdd   : > { %3165 = vmatprep.subr.bf16.mxu1 %v3397_v35  ;;  %2291 = vmatprep.mubr.bf16.mxu0 %v1598_v51  ;;  %v1340_v35 = vld [vmem:[%s4622_s0 + $0x108] sm:$0xff]  ;;  %v1537_v3 = vmul.f32 %v4010_v41, %v1377_v0  ;;  %v1526_v8 = vmul.f32 %v4015_v44, %v1366_v4  ;;  %v3430_v32 = vld [vmem:[%s3973_s17 + $0x210] sm:$0xff]   ;;  %v1330_v4 = vld [vmem:[%s4622_s0 + $0xb8] sm:$0xff] }
  0xde   : > { %2355 = vmatprep.mubr.bf16.mxu1 %v1600_v53  ;;  %v1500_v38 = vmul.f32 %v4015_v44, %v1340_v35  ;;  %v1512_v53 = vmul.f32 %v4026_v49, %v1352_v48  ;;  %v1392_v35 = vld [vmem:[%s4622_s0 + $0x2a8] sm:$0x1] }
  0xdf   : > { %3126 = vmatpush3.bf16.msra.mxu0 %v3398_v36  ;;  %v1353_v36 = vld [vmem:[%s4622_s0 + $0x170] sm:$0xff]  ;;  %v1589_v15 = vpack.c.bf16 %v1537_v3, %v1524_v2  ;;  %v1328_v0 = vld [vmem:[%s4622_s0 + $0xa8] sm:$0xff] }
  0xe0   : > { %3166 = vmatpush3.bf16.msra.mxu1 %v3399_v37  ;;  %3127 = vmatprep.subr.bf16.mxu0 %v3400_v50  ;;  %v1511_v37 = vmul.f32 %v4010_v41, %v1351_v33  ;;  %v1513_v39 = vmul.f32 %v4015_v44, %v1353_v36  ;;  %v1499_v50 = vmul.f32 %v4026_v49, %v1339_v45  ;;  %v3431_v33 = vld [vmem:[%s3973_s17 + $0x290] sm:$0xff]  }
  0xe1   : > { %3167 = vmatprep.subr.bf16.mxu1 %v3401_v52  ;;  %v1389_v36 = vld [vmem:[%s4622_s0 + $0x290] sm:$0x1]  ;;  %v1551_v45 = vmul.f32 %v4026_v49, %v1391_v43 }
  0xe2   : > { %2292 = vmatmul.mubr.bf16.gmra.mxu0 %v1597_v54  ;;  %v1576_v51 = vpack.c.bf16 %v1511_v37, %v1498_v34  ;;  %v1578_v52 = vpack.c.bf16 %v1513_v39, %v1500_v38  ;;  %v3416_v54 = vld [vmem:[%s3973_s17 + $0x268] sm:$0xff]   ;;  %v1552_v39 = vmul.f32 %v4015_v44, %v1392_v35  ;;  %v1549_v40 = vmul.f32 %v4022_v47, %v1389_v36  ;;  %v3436_v47 = vld [vmem:[%s3973_s17 + $0x240] sm:$0xff]  }
  0xe3   : > { %2356 = vmatmul.mubr.bf16.gmra.mxu1 %v1599_v55  ;;  %3128 = vmatpush3.bf16.msra.mxu0 %v3402_v56  ;;  %v1575_v55 = vpack.c.bf16 %v1510_v24, %v1497_v46  ;;  %v3417_v56 = vld [vmem:[%s3973_s17 + $0x2e8] sm:$0xff]   ;;  %v1317_v3 = vld [vmem:[%s4622_s0 + $0x50] sm:$0xff] }
  0xe4   : > { %3168 = vmatpush3.bf16.msra.mxu1 %v3403_v58  ;;  %3129 = vmatprep.subr.bf16.mxu0 %v3404_v26  ;;  %v1577_v58 = vpack.c.bf16 %v1512_v53, %v1499_v50  ;;  %v3418_v26 = vld [vmem:[%s3973_s17 + $0x228] sm:$0xff]   ;;  %v1604_v48 = vpack.c.bf16 %v1552_v39, %v1552_v39  ;;  %v1601_v50 = vpack.c.bf16 %v1549_v40, %v1549_v40  ;;  %v3437_v53 = vld [vmem:[%s3973_s17 + $0x2c0] sm:$0xff]  }
  0xe5   : > { %3169 = vmatprep.subr.bf16.mxu1 %v3405_v1  ;;  %2395 = vmatprep.mubr.bf16.mxu0 %v1563_v14  ;;  %v3419_v1 = vld [vmem:[%s3973_s17 + $0x2a8] sm:$0xff]   ;;  %v1381_v43 = vld [vmem:[%s4622_s0 + $0x250] sm:$0xff] }
  0xe6   : > { %2459 = vmatprep.mubr.bf16.mxu1 %v1565_v19  ;;  %v1378_v14 = vld [vmem:[%s4622_s0 + $0x238] sm:$0xff]  ;;  %v4320_v37 = vld [vmem:[%s4623_s1 + $0x8] sm:$0x1f] }
  0xe7   : > { %3130 = vmatpush3.bf16.msra.mxu0 %v3406_v5  ;;  %v3420_v5 = vld [vmem:[%s3973_s17 + $0x260] sm:$0xff]   ;;  %v1538_v19 = vmul.f32 %v4026_v49, %v1378_v14  ;;  %v1390_v34 = vld [vmem:[%s4622_s0 + $0x298] sm:$0x1]  ;;  %v1368_v39 = vld [vmem:[%s4622_s0 + $0x1e8] sm:$0xff] }
  0xe8   : > { %3170 = vmatpush3.bf16.msra.mxu1 %v3407_v60  ;;  %3195 = vmatprep.subr.bf16.mxu0 %v3408_v17  ;;  %v3421_v60 = vld [vmem:[%s3973_s17 + $0x2e0] sm:$0xff]   ;;  %v1525_v17 = vmul.f32 %v4026_v49, %v1365_v12  ;;  %v1550_v38 = vmul.f32 %v4010_v41, %v1390_v34  ;;  %v3432_v46 = vld [vmem:[%s3973_s17 + $0x248] sm:$0xff]   ;;  %v4337_v49 = vrot.slane %v4320_v37, %v1408_v18 }
  0xe9   : > { %3235 = vmatprep.subr.bf16.mxu1 %v3409_v21  ;;  %v1591_v21 = vpack.c.bf16 %v1539_v9, %v1526_v8  ;;  %v3434_v41 = vld [vmem:[%s3973_s17 + $0x208] sm:$0xff]   ;;  %v3438_v18 = vld [vmem:[%s3973_s17 + $0x200] sm:$0xff]  }
  0xea   : > { %2396 = vmatmul.mubr.bf16.vlgmr.msra.gmra.mxu0 %v1562_v20  ;;  %v3424_v20 = vld [vmem:[%s3973_s17 + $0x258] sm:$0xff]   ;;  %v1602_v24 = vpack.c.bf16 %v1550_v38, %v1550_v38  ;;  %v3435_v44 = vld [vmem:[%s3973_s17 + $0x288] sm:$0xff]   ;;  %v3441_v12 = vld [vmem:[%s3973_s17 + $0x320] sm:$0xff]  }
  0xeb   : > { %2460 = vmatmul.mubr.bf16.vlgmr.msra.gmra.mxu1 %v1564_v23  ;;  %3196 = vmatpush3.bf16.msra.mxu0 %v3410_v25  ;;  %v3425_v23 = vld [vmem:[%s3973_s17 + $0x2d8] sm:$0xff]   ;;  %v1588_v25 = vpack.c.bf16 %v1536_v16, %v1523_v11 }
  0xec   : > { %3236 = vmatpush3.bf16.msra.mxu1 %v3411_v27  ;;  %3197 = vmatprep.subr.bf16.mxu0 %v3412_v28  ;;  %v1590_v27 = vpack.c.bf16 %v1538_v19, %v1525_v17  ;;  %v3426_v28 = vld [vmem:[%s3973_s17 + $0x218] sm:$0xff]   ;;  %v1355_v17 = vld [vmem:[%s4622_s0 + $0x180] sm:$0xff] }
  0xed   : > { %3237 = vmatprep.subr.bf16.mxu1 %v3413_v29  ;;  %2403 = vmatprep.mubr.bf16.mxu0 %v1576_v51  ;;  %v3427_v29 = vld [vmem:[%s3973_s17 + $0x298] sm:$0xff]   ;;  %v3433_v51 = vld [vmem:[%s3973_s17 + $0x2c8] sm:$0xff]  }
  0xee   : > { %2467 = vmatprep.mubr.bf16.mxu1 %v1578_v52  ;;  %v1603_v52 = vpack.c.bf16 %v1551_v45, %v1551_v45  ;;  %v1342_v16 = vld [vmem:[%s4622_s0 + $0x118] sm:$0xff]  ;;  %v1344_v19 = vld [vmem:[%s4622_s0 + $0x128] sm:$0xff]  ;;  %v1528_v45 = vmul.f32 %v4337_v49, %v1368_v39 }
  0xef   : > { %3198 = vmatpush3.bf16.msra.mxu0 %v3414_v30  ;;  %v3428_v30 = vld [vmem:[%s3973_s17 + $0x250] sm:$0xff]   ;;  %v3442_v38 = vld [vmem:[%s3973_s17 + $0x318] sm:$0xff]  }
  0xf0   : > { %3238 = vmatpush3.bf16.msra.mxu1 %v3415_v31  ;;  %3199 = vmatprep.subr.bf16.mxu0 %v3416_v54  ;;  %v3429_v31 = vld [vmem:[%s3973_s17 + $0x2d0] sm:$0xff]   ;;  %v4343_v54 = vrot.slane %v4320_v37, %v1416_v22 }
  0xf1   : > { %3239 = vmatprep.subr.bf16.mxu1 %v3417_v56  ;;  %v4352_v56 = vrot.slane %v4320_v37, %v1412_v59  ;;  %v1329_v22 = vld [vmem:[%s4622_s0 + $0xb0] sm:$0xff]  ;;  %v1318_v59 = vld [vmem:[%s4622_s0 + $0x58] sm:$0xff] }
  0xf2   : > { %2404 = vmatmul.mubr.bf16.gmra.mxu0 %v1575_v55  ;;  %v4347_v55 = vrot.slane %v4320_v37, %v4036_v57 }
  0xf3   : > { %2468 = vmatmul.mubr.bf16.gmra.mxu1 %v1577_v58  ;;  %3200 = vmatpush3.bf16.msra.mxu0 %v3418_v26  ;;  %v3439_v58 = vld [vmem:[%s3973_s17 + $0x280] sm:$0xff]   ;;  %v1316_v26 = vld [vmem:[%s4622_s0 + $0x48] sm:$0xff]  ;;  %v1477_v8 = vmul.f32 %v4352_v56, %v1317_v3  ;;  %v1490_v9 = vmul.f32 %v4352_v56, %v1330_v4 }
  0xf4   : > { %3240 = vmatpush3.bf16.msra.mxu1 %v3419_v1  ;;  %3201 = vmatprep.subr.bf16.mxu0 %v3420_v5  ;;  %v1476_v1 = vmul.f32 %v4337_v49, %v1316_v26  ;;  %v1489_v5 = vmul.f32 %v4337_v49, %v1329_v22  ;;  %v1488_v7 = vmul.f32 %v4347_v55, %v1328_v0  ;;  %v3443_v22 = vld [vmem:[%s3973_s17 + $0x310] sm:$0xff]  }
  0xf5   : > { %3241 = vmatprep.subr.bf16.mxu1 %v3421_v60  ;;  %2411 = vmatprep.mubr.bf16.mxu0 %v1589_v15  ;;  %v1331_v60 = vld [vmem:[%s4622_s0 + $0xc0] sm:$0xff]  ;;  %v1568_v15 = vpack.c.bf16 %v1490_v9, %v1477_v8 }
  0xf6   : > { %2475 = vmatprep.mubr.bf16.mxu1 %v1591_v21  ;;  %v1491_v63 = vmul.f32 %v4343_v54, %v1331_v60  ;;  %v1567_v6 = vpack.c.bf16 %v1489_v5, %v1476_v1  ;;  %v1515_v21 = vmul.f32 %v4337_v49, %v1355_v17  ;;  %v1394_v1 = vld [vmem:[%s4622_s0 + $0x2b8] sm:$0x1]  ;;  %v1396_v5 = vld [vmem:[%s4622_s0 + $0x2c8] sm:$0x1]  ;;  %v1319_v9 = vld [vmem:[%s4622_s0 + $0x60] sm:$0xff] }
  0xf7   : > { %3202 = vmatpush3.bf16.msra.mxu0 %v3422_v61  ;;  %v1315_v61 = vld [vmem:[%s4622_s0 + $0x40] sm:$0xff]  ;;  %v1556_v0 = vmul.f32 %v4343_v54, %v1396_v5 }
  0xf8   : > { %3242 = vmatpush3.bf16.msra.mxu1 %v3423_v62  ;;  %3203 = vmatprep.subr.bf16.mxu0 %v3424_v20  ;;  %v1478_v62 = vmul.f32 %v4343_v54, %v1318_v59  ;;  %v1475_v2 = vmul.f32 %v4347_v55, %v1315_v61  ;;  %v1502_v20 = vmul.f32 %v4337_v49, %v1342_v16 }
  0xf9   : > { %3243 = vmatprep.subr.bf16.mxu1 %v3425_v23  ;;  %v1357_v23 = vld [vmem:[%s4622_s0 + $0x190] sm:$0xff]  ;;  %v1608_v8 = vpack.c.bf16 %v1556_v0, %v1556_v0 }
  0xfa   : > { %2412 = vmatmul.mubr.bf16.gmra.mxu0 %v1588_v25  ;;  %v1569_v11 = vpack.c.bf16 %v1491_v63, %v1478_v62  ;;  %v1566_v14 = vpack.c.bf16 %v1488_v7, %v1475_v2  ;;  %v1504_v25 = vmul.f32 %v4343_v54, %v1344_v19  ;;  %v1580_v34 = vpack.c.bf16 %v1515_v21, %v1502_v20  ;;  %v3444_v2 = vld [vmem:[%s3973_s17 + $0x308] sm:$0xff]  }
  0xfb   : > { %2476 = vmatmul.mubr.bf16.gmra.mxu1 %v1590_v27  ;;  %3204 = vmatpush3.bf16.msra.mxu0 %v3426_v28  ;;  %v1341_v27 = vld [vmem:[%s4622_s0 + $0x110] sm:$0xff]  ;;  %v1354_v28 = vld [vmem:[%s4622_s0 + $0x178] sm:$0xff]  ;;  %v1554_v63 = vmul.f32 %v4337_v49, %v1394_v1 }
  0xfc   : > { %3244 = vmatpush3.bf16.msra.mxu1 %v3427_v29  ;;  %3205 = vmatprep.subr.bf16.mxu0 %v3428_v30  ;;  %v1517_v29 = vmul.f32 %v4343_v54, %v1357_v23  ;;  %v1501_v30 = vmul.f32 %v4347_v55, %v1341_v27 }
  0xfd   : > { %3245 = vmatprep.subr.bf16.mxu1 %v3429_v31  ;;  %2419 = vmatprep.mubr.bf16.mxu0 %v1602_v24  ;;  %v1514_v31 = vmul.f32 %v4347_v55, %v1354_v28  ;;  %v1383_v24 = vld [vmem:[%s4622_s0 + $0x260] sm:$0xff]  ;;  %v1606_v7 = vpack.c.bf16 %v1554_v63, %v1554_v63 }
  0xfe   : > { %2483 = vmatprep.mubr.bf16.mxu1 %v1604_v48  ;;  %v1582_v40 = vpack.c.bf16 %v1517_v29, %v1504_v25  ;;  %v1541_v48 = vmul.f32 %v4337_v49, %v1381_v43  ;;  %v1393_v49 = vld [vmem:[%s4622_s0 + $0x2b0] sm:$0x1] }
  0xff   : > { %3206 = vmatpush3.bf16.msra.mxu0 %v3430_v32  ;;  %v1343_v32 = vld [vmem:[%s4622_s0 + $0x120] sm:$0xff]  ;;  %v1397_v25 = vld [vmem:[%s4622_s0 + $0x2d0] sm:$0x1] }
 0x100   : > { %3246 = vmatpush3.bf16.msra.mxu1 %v3431_v33  ;;  %3207 = vmatprep.subr.bf16.mxu0 %v3432_v46  ;;  %v1356_v33 = vld [vmem:[%s4622_s0 + $0x188] sm:$0xff]  ;;  %v1503_v35 = vmul.f32 %v4352_v56, %v1343_v32  ;;  %v1370_v46 = vld [vmem:[%s4622_s0 + $0x1f8] sm:$0xff] }
 0x101   : > { %3247 = vmatprep.subr.bf16.mxu1 %v3433_v51  ;;  %v1516_v36 = vmul.f32 %v4352_v56, %v1356_v33  ;;  %v1543_v51 = vmul.f32 %v4343_v54, %v1383_v24 }
 0x102   : > { %2420 = vmatmul.mubr.bf16.gmra.mxu0 %v1601_v50  ;;  %v1530_v50 = vmul.f32 %v4343_v54, %v1370_v46  ;;  %v1395_v54 = vld [vmem:[%s4622_s0 + $0x2c0] sm:$0x1] }
 0x103   : > { %2484 = vmatmul.mubr.bf16.gmra.mxu1 %v1603_v52  ;;  %3208 = vmatpush3.bf16.msra.mxu0 %v3434_v41  ;;  %v1367_v52 = vld [vmem:[%s4622_s0 + $0x1e0] sm:$0xff]  ;;  %v1380_v41 = vld [vmem:[%s4622_s0 + $0x248] sm:$0xff] }
 0x104   : > { %3248 = vmatpush3.bf16.msra.mxu1 %v3435_v44  ;;  %3209 = vmatprep.subr.bf16.mxu0 %v3436_v47  ;;  %v1579_v44 = vpack.c.bf16 %v1514_v31, %v1501_v30  ;;  %v1581_v47 = vpack.c.bf16 %v1516_v36, %v1503_v35  ;;  %v1595_v26 = vpack.c.bf16 %v1543_v51, %v1530_v50 }
 0x105   : > { %3249 = vmatprep.subr.bf16.mxu1 %v3437_v53  ;;  %2523 = vmatprep.mubr.bf16.mxu0 %v1567_v6  ;;  %v1369_v53 = vld [vmem:[%s4622_s0 + $0x1f0] sm:$0xff]  ;;  %v1527_v59 = vmul.f32 %v4347_v55, %v1367_v52  ;;  %v1540_v60 = vmul.f32 %v4347_v55, %v1380_v41  ;;  %v1453_v6 = vrot.slane %v4320_v37, %v1420_v42  ;;  %v1371_v42 = vld [vmem:[%s4622_s0 + $0x200] sm:$0xff]  ;;  %v1384_v37 = vld [vmem:[%s4622_s0 + $0x268] sm:$0xff] }
 0x106   : > { %2587 = vmatprep.mubr.bf16.mxu1 %v1569_v11  ;;  %v1529_v61 = vmul.f32 %v4352_v56, %v1369_v53  ;;  %v1553_v11 = vmul.f32 %v4347_v55, %v1393_v49  ;;  %v1345_v55 = vld [vmem:[%s4622_s0 + $0x130] sm:$0xff] }
 0x107   : > { %3210 = vmatpush3.bf16.msra.mxu0 %v3438_v18  ;;  %v1593_v18 = vpack.c.bf16 %v1541_v48, %v1528_v45  ;;  %v1592_v3 = vpack.c.bf16 %v1540_v60, %v1527_v59  ;;  %v1531_v16 = vmul.f32 %v1453_v6, %v1371_v42  ;;  %v1544_v17 = vmul.f32 %v1453_v6, %v1384_v37 }
 0x108   : > { %3250 = vmatpush3.bf16.msra.mxu1 %v3439_v58  ;;  %3285 = vmatprep.subr.bf16.mxu0 %v3440_v10  ;;  %v1382_v58 = vld [vmem:[%s4622_s0 + $0x258] sm:$0xff]  ;;  %v1605_v19 = vpack.c.bf16 %v1553_v11, %v1553_v11  ;;  %v1505_v27 = vmul.f32 %v1453_v6, %v1345_v55  ;;  %v1557_v29 = vmul.f32 %v1453_v6, %v1397_v25 }
 0x109   : > { %3305 = vmatprep.subr.bf16.mxu1 %v3440_v10  ;;  %v1542_v62 = vmul.f32 %v4352_v56, %v1382_v58  ;;  %v1596_v23 = vpack.c.bf16 %v1544_v17, %v1531_v16 }
 0x10a   : > { %2524 = vmatmul.mubr.bf16.vlgmr.msra.gmra.mxu0 %v1566_v14  ;;  %v1479_v14 = vmul.f32 %v1453_v6, %v1319_v9  ;;  %v1609_v31 = vpack.c.bf16 %v1557_v29, %v1557_v29 }
 0x10b   : > { %2588 = vmatmul.mubr.bf16.vlgmr.msra.gmra.mxu1 %v1568_v15  ;;  %3286 = vmatpush3.bf16.msra.mxu0 %v3440_v10  ;;  %v1594_v4 = vpack.c.bf16 %v1542_v62, %v1529_v61  ;;  %v1492_v15 = vmul.f32 %v1453_v6, %v1332_v13 }
 0x10c   : > { %3311 = vmatpush3.bf16.msra.mxu1 %v3440_v10  ;;  %3287 = vmatprep.subr.bf16.mxu0 %v3441_v12  ;;  %v3445_v10 = vld [vmem:[%s3973_s17 + $0x300] sm:$0xff]  }
 0x10d   : > { %3306 = vmatprep.subr.bf16.mxu1 %v3441_v12  ;;  %2531 = vmatprep.mubr.bf16.mxu0 %v1580_v34  ;;  %v1570_v21 = vpack.c.bf16 %v1492_v15, %v1479_v14 }
 0x10e   : > { %2595 = vmatprep.mubr.bf16.mxu1 %v1582_v40 }
 0x10f   : > { %3288 = vmatpush3.bf16.msra.mxu0 %v3441_v12 }
 0x110   : > { %3312 = vmatpush3.bf16.msra.mxu1 %v3441_v12  ;;  %3289 = vmatprep.subr.bf16.mxu0 %v3442_v38  ;;  %v1555_v12 = vmul.f32 %v4352_v56, %v1395_v54  ;;  %v1358_v56 = vld [vmem:[%s4622_s0 + $0x198] sm:$0xff] }
 0x111   : > { %3307 = vmatprep.subr.bf16.mxu1 %v3442_v38  ;;  %v1518_v28 = vmul.f32 %v1453_v6, %v1358_v56 }
 0x112   : > { %2532 = vmatmul.mubr.bf16.gmra.mxu0 %v1579_v44  ;;  %v1607_v20 = vpack.c.bf16 %v1555_v12, %v1555_v12 }
 0x113   : > { %2596 = vmatmul.mubr.bf16.gmra.mxu1 %v1581_v47  ;;  %3290 = vmatpush3.bf16.msra.mxu0 %v3442_v38  ;;  %v1583_v30 = vpack.c.bf16 %v1518_v28, %v1505_v27 }
 0x114   : > { %2539 = vmatprep.mubr.bf16.mxu0 %v1593_v18  ;;  %2603 = vmatprep.mubr.bf16.mxu1 %v1595_v26 }
 0x115   : > { %3291 = vmatprep.subr.bf16.mxu0 %v3443_v22  ;;  %3313 = vmatpush3.bf16.msra.mxu1 %v3442_v38 }
 0x116   : > { %3308 = vmatprep.subr.bf16.mxu1 %v3443_v22 }
 0x117   : > { %3292 = vmatpush3.bf16.msra.mxu0 %v3443_v22 }
 0x118   : > { %3293 = vmatprep.subr.bf16.mxu0 %v3444_v2 }
 0x119   : > { %3314 = vmatpush3.bf16.msra.mxu1 %v3443_v22 }
 0x11a   : > { %2540 = vmatmul.mubr.bf16.gmra.mxu0 %v1592_v3  ;;  %3309 = vmatprep.subr.bf16.mxu1 %v3444_v2 }
 0x11b   : > { %2604 = vmatmul.mubr.bf16.gmra.mxu1 %v1594_v4  ;;  %2547 = vmatprep.mubr.bf16.mxu0 %v1606_v7 }
 0x11c   : > { %2611 = vmatprep.mubr.bf16.mxu1 %v1608_v8  ;;  %3294 = vmatpush3.bf16.msra.mxu0 %v3444_v2 }
 0x11d   : > { %3315 = vmatpush3.bf16.msra.mxu1 %v3444_v2  ;;  %3295 = vmatprep.subr.bf16.mxu0 %v3445_v10 }
 0x11e   : > { %3310 = vmatprep.subr.bf16.mxu1 %v3445_v10 }
 0x120   : > { %3296 = vmatpush3.bf16.msra.mxu0 %v3445_v10 }
 0x121   : > { %3316 = vmatpush3.bf16.msra.mxu1 %v3445_v10 }
 0x122   : > { %2548 = vmatmul.mubr.bf16.gmra.mxu0 %v1605_v19 }
 0x123   : > { %2612 = vmatmul.mubr.bf16.gmra.mxu1 %v1607_v20  ;;  %3297 = vmatprep.mubr.msk.bf16.mxu0 %vm2222_vm0, %v1570_v21 }
 0x124   : > { %3301 = vmatprep.mubr.msk.bf16.mxu1 %vm2222_vm0, %v1596_v23 }
 0x12a   : > { %3298 = vmatmul.mubr.msk.bf16.vlgmr.msra.gmra.mxu0 %vm2222_vm0, %v1583_v30 }
 0x12b   : > { %3302 = vmatmul.mubr.msk.bf16.vlgmr.msra.gmra.mxu1 %vm2222_vm0, %v1609_v31 }
 0x18a   : > { %v3051_v32 = vpop.f32.mrf.mxu0 }
 0x18b   : > { %v3091_v33 = vpop.f32.mrf.mxu1 }
 0x18c   : > { %v3052_v34 = vpop.f32.mrf.mxu0 }
 0x18d   : > { %v3053_v35 = vadd.f32 %v3052_v34, %v3051_v32  ;;  %v3092_v36 = vpop.f32.mrf.mxu1 }
 0x18e   : > { %v3093_v38 = vadd.f32 %v3092_v36, %v3091_v33  ;;  %v3054_v39 = vpop.f32.mrf.mxu0 }
 0x18f   : > { %v3094_v40 = vpop.f32.mrf.mxu1 }
 0x190   : > { %v2334_v43 = vadd.f32 %v3093_v38, %v3053_v35  ;;  %v3055_v45 = vpop.f32.mrf.mxu0 }
 0x191   : > { %v3056_v46 = vadd.f32 %v3055_v45, %v3054_v39  ;;  %v3095_v24 = vpop.f32.mrf.mxu1 }
 0x192   : > { %v3096_v48 = vadd.f32 %v3095_v24, %v3094_v40  ;;  %v3057_v51 = vpop.f32.mrf.mxu0 }
 0x193   : > { %v3097_v52 = vpop.f32.mrf.mxu1 }
 0x194   : > { %v4498_v50 = vadd.f32 %v3096_v48, %v3056_v46  ;;  %v3058_v41 = vpop.f32.mrf.mxu0 }
 0x195   : > { %v3098_v44 = vpop.f32.mrf.mxu1  ;;  %v3059_v47 = vadd.f32 %v3058_v41, %v3057_v51 }
 0x196   : > { %v3099_v53 = vadd.f32 %v3098_v44, %v3097_v52  ;;  %v3060_v18 = vpop.f32.mrf.mxu0 }
 0x197   : > { %v3100_v58 = vpop.f32.mrf.mxu1 }
 0x198   : > { %v4500_v26 = vadd.f32 %v3099_v53, %v3059_v47  ;;  %v3061_v22 = vpop.f32.mrf.mxu0 }
 0x199   : > { %v3101_v1 = vpop.f32.mrf.mxu1  ;;  %v3062_v5 = vadd.f32 %v3061_v22, %v3060_v18 }
 0x19a   : > { %v3102_v59 = vadd.f32 %v3101_v1, %v3100_v58  ;;  %v3063_v61 = vpop.f32.mrf.mxu0 }
 0x19b   : > { %v3103_v62 = vpop.f32.mrf.mxu1 }
 0x19c   : > { %v4502_v60 = vadd.f32 %v3102_v59, %v3062_v5  ;;  %v3064_v63 = vpop.f32.mrf.mxu0 }
 0x19d   : > { %v3065_v0 = vadd.f32 %v3064_v63, %v3063_v61  ;;  %v3104_v2 = vpop.f32.mrf.mxu1 }
 0x19e   : > { %v3105_v3 = vadd.f32 %v3104_v2, %v3103_v62  ;;  %v3066_v4 = vpop.f32.mrf.mxu0 }
 0x19f   : > { %v3106_v6 = vpop.f32.mrf.mxu1 }
 0x1a0   : > { %v4504_v7 = vadd.f32 %v3105_v3, %v3065_v0  ;;  %v3067_v8 = vpop.f32.mrf.mxu0 }
 0x1a1   : > { %v3068_v49 = vadd.f32 %v3067_v8, %v3066_v4  ;;  %v3107_v54 = vpop.f32.mrf.mxu1 }
 0x1a2   : > { %v3108_v9 = vadd.f32 %v3107_v54, %v3106_v6  ;;  %v3069_v42 = vpop.f32.mrf.mxu0 }
 0x1a3   : > { %v3109_v37 = vpop.f32.mrf.mxu1 }
 0x1a4   : > { %v4506_v13 = vadd.f32 %v3108_v9, %v3068_v49  ;;  %v3070_v10 = vpop.f32.mrf.mxu0 }
 0x1a5   : > { %v3071_v11 = vadd.f32 %v3070_v10, %v3069_v42  ;;  %v3110_v12 = vpop.f32.mrf.mxu1 }
 0x1a6   : > { %v3111_v14 = vadd.f32 %v3110_v12, %v3109_v37  ;;  %v3072_v15 = vpop.f32.mrf.mxu0 }
 0x1a7   : > { %v3112_v16 = vpop.f32.mrf.mxu1 }
 0x1a8   : > { %v4508_v17 = vadd.f32 %v3111_v14, %v3071_v11  ;;  %v3073_v19 = vpop.f32.mrf.mxu0 }
 0x1a9   : > { %v3113_v20 = vpop.f32.mrf.mxu1 }
 0x1aa   : > { %v3131_v21 = vpop.f32.mrf.mxu0 }
 0x1ab   : > { %v3171_v23 = vpop.f32.mrf.mxu1 }
 0x1ac   : > { %v3132_v55 = vpop.f32.mrf.mxu0 }
 0x1ad   : > { %v3133_v56 = vadd.f32 %v3132_v55, %v3131_v21  ;;  %v3172_v25 = vpop.f32.mrf.mxu1 }
 0x1ae   : > { %v3173_v27 = vadd.f32 %v3172_v25, %v3171_v23  ;;  %v3134_v28 = vpop.f32.mrf.mxu0 }
 0x1af   : > { %v2398_v29 = vadd.f32 %v3133_v56, %v2334_v43  ;;  %v3174_v30 = vpop.f32.mrf.mxu1 }
 0x1b0   : > { %v3135_v32 = vpop.f32.mrf.mxu0 }
 0x1b1   : > { %v4510_v31 = vadd.f32 %v3173_v27, %v2398_v29  ;;  %v3175_v33 = vpop.f32.mrf.mxu1  ;;  %v3136_v55 = vadd.f32 %v3135_v32, %v3134_v28 }
 0x1b2   : > { %v3137_v34 = vpop.f32.mrf.mxu0  ;;  %v3176_v57 = vadd.f32 %v3175_v33, %v3174_v30 }
 0x1b3   : > { %v3177_v35 = vpop.f32.mrf.mxu1 }
 0x1b4   : > { %v3138_v36 = vpop.f32.mrf.mxu0 }
 0x1b5   : > { %v3178_v38 = vpop.f32.mrf.mxu1  ;;  %v3139_v56 = vadd.f32 %v3138_v36, %v3137_v34 }
 0x1b6   : > { %v3140_v39 = vpop.f32.mrf.mxu0 }
 0x1b7   : > { %v3180_v40 = vpop.f32.mrf.mxu1 }
 0x1b8   : > { %v3141_v45 = vpop.f32.mrf.mxu0 }
 0x1b9   : > { %v3181_v46 = vpop.f32.mrf.mxu1  ;;  %v3142_v29 = vadd.f32 %v3141_v45, %v3140_v39 }
 0x1ba   : > { %v3143_v24 = vpop.f32.mrf.mxu0 }
 0x1bb   : > { %v4512_v48 = vpop.f32.mrf.mxu1  ;;  %v2409_v32 = vadd.f32 %v3142_v29, %v4502_v60 }
 0x1bc   : > { %v3144_v51 = vpop.f32.mrf.mxu0 }
 0x1bd   : > { %v4514_v52 = vpop.f32.mrf.mxu1  ;;  %v3145_v45 = vadd.f32 %v3144_v51, %v3143_v24 }
 0x1be   : > { %v3146_v43 = vpop.f32.mrf.mxu0  ;;  %v3185_v24 = vadd.f32 %v4514_v52, %v4512_v48 }
 0x1bf   : > { %v4516_v41 = vpop.f32.mrf.mxu1  ;;  %v2414_v60 = vadd.f32 %v3145_v45, %v4504_v7 }
 0x1c0   : > { %v3147_v44 = vpop.f32.mrf.mxu0 }
 0x1c1   : > { %v4518_v47 = vpop.f32.mrf.mxu1 }
 0x1c2   : > { %v3149_v53 = vpop.f32.mrf.mxu0 }
 0x1c3   : > { %v3189_v18 = vpop.f32.mrf.mxu1 }
 0x1c4   : > { %v3150_v58 = vpop.f32.mrf.mxu0 }
 0x1c5   : > { %v3190_v22 = vpop.f32.mrf.mxu1  ;;  %v3151_v20 = vadd.f32 %v3150_v58, %v3149_v53  ;;  %v2406_v53 = vadd.f32 %v3139_v56, %v4500_v26  ;;  %v3179_v58 = vadd.f32 %v3178_v38, %v3177_v35 }
 0x1c6   : > { %v3152_v1 = vpop.f32.mrf.mxu0 }
 0x1c7   : > { %v3192_v5 = vpop.f32.mrf.mxu1  ;;  %v2422_v1 = vadd.f32 %v3151_v20, %v4508_v17 }
 0x1c8   : > { %v3153_v59 = vpop.f32.mrf.mxu0  ;;  %v3191_v5 = vadd.f32 %v3190_v22, %v3189_v18 }
 0x1c9   : > { %v3193_v61 = vpop.f32.mrf.mxu1 }
 0x1ca   : > { %v3211_v62 = vpop.f32.mrf.mxu0  ;;  %v2486_v34 = vadd.f32 %v3191_v5, %v2422_v1 }
 0x1cb   : > { %v3251_v63 = vpop.f32.mrf.mxu1 }
 0x1cc   : > { %v3212_v0 = vpop.f32.mrf.mxu0 }
 0x1cd   : > { %v3252_v2 = vpop.f32.mrf.mxu1  ;;  %v3213_v22 = vadd.f32 %v3212_v0, %v3211_v62 }
 0x1ce   : > { %v3214_v3 = vpop.f32.mrf.mxu0  ;;  %v3253_v51 = vadd.f32 %v3252_v2, %v3251_v63  ;;  %v2478_v2 = vadd.f32 %v3185_v24, %v2414_v60 }
 0x1cf   : > { %v3254_v4 = vpop.f32.mrf.mxu1  ;;  %v2526_v62 = vadd.f32 %v3213_v22, %v4510_v31 }
 0x1d0   : > { %v3215_v6 = vpop.f32.mrf.mxu0 }
 0x1d1   : > { %v3255_v8 = vpop.f32.mrf.mxu1  ;;  %v3216_v30 = vadd.f32 %v3215_v6, %v3214_v3 }
 0x1d2   : > { %v3217_v49 = vpop.f32.mrf.mxu0 }
 0x1d3   : > { %v3257_v54 = vpop.f32.mrf.mxu1 }
 0x1d4   : > { %v3218_v9 = vpop.f32.mrf.mxu0 }
 0x1d5   : > { %v3258_v42 = vpop.f32.mrf.mxu1  ;;  %v3219_v20 = vadd.f32 %v3218_v9, %v3217_v49 }
 0x1d6   : > { %v3220_v37 = vpop.f32.mrf.mxu0  ;;  %v3259_v49 = vadd.f32 %v3258_v42, %v3257_v54 }
 0x1d7   : > { %v4520_v10 = vpop.f32.mrf.mxu1 }
 0x1d8   : > { %v3221_v11 = vpop.f32.mrf.mxu0 }
 0x1d9   : > { %v4522_v12 = vpop.f32.mrf.mxu1 }
 0x1da   : > { %v3223_v14 = vpop.f32.mrf.mxu0  ;;  %v3262_v31 = vadd.f32 %v4522_v12, %v4520_v10 }
 0x1db   : > { %v4524_v15 = vpop.f32.mrf.mxu1 }
 0x1dc   : > { %4632 = vst [vmem:[#allocation5_spill] sm:$0xff] %v4524_v15  ;;  %v3224_v16 = vpop.f32.mrf.mxu0  ;;  %v2401_v15 = vadd.f32 %v3136_v55, %v4498_v50  ;;  %v3148_v50 = vadd.f32 %v3147_v44, %v3146_v43  ;;  %v3256_v43 = vadd.f32 %v3255_v8, %v3254_v4  ;;  %v2590_v4 = vadd.f32 %v3253_v51, %v2526_v62 }
 0x1dd   : > { %v4526_v19 = vpop.f32.mrf.mxu1 }
 0x1de   : > { %4633 = vst [vmem:[#allocation6_spill] sm:$0xff] %v4526_v19  ;;  %v3226_v21 = vpop.f32.mrf.mxu0  ;;  %v3182_v19 = vadd.f32 %v3181_v46, %v3180_v40  ;;  %v2465_v38 = vadd.f32 %v3176_v57, %v2401_v15  ;;  %v2470_v40 = vadd.f32 %v3179_v58, %v2406_v53  ;;  %v2417_v3 = vadd.f32 %v3148_v50, %v4506_v13 }
 0x1df   : > { %v4528_v23 = vpop.f32.mrf.mxu1  ;;  %v3188_v57 = vadd.f32 %v4518_v47, %v4516_v41  ;;  %v3225_v15 = vadd.f32 %v3224_v16, %v3223_v14 }
 0x1e0   : > { %4634 = vst [vmem:[#allocation7_spill] sm:$0xff] %v4528_v23  ;;  %v3227_v25 = vpop.f32.mrf.mxu0  ;;  %v2473_v46 = vadd.f32 %v3182_v19, %v2409_v32  ;;  %v2529_v0 = vadd.f32 %v3216_v30, %v2465_v38  ;;  %v2534_v6 = vadd.f32 %v3219_v20, %v2470_v40 }
 0x1e1   : > { %v4530_v27 = vpop.f32.mrf.mxu1  ;;  %v3228_v13 = vadd.f32 %v3227_v25, %v3226_v21  ;;  %v2481_v41 = vadd.f32 %v3188_v57, %v2417_v3  ;;  %v2542_v42 = vadd.f32 %v3225_v15, %v2478_v2 }
 0x1e2   : > { %v3229_v59 = vpop.f32.mrf.mxu0  ;;  %v2593_v8 = vadd.f32 %v3256_v43, %v2529_v0  ;;  %v2598_v47 = vadd.f32 %v3259_v49, %v2534_v6 }
 0x1e3   : > { %v3269_v61 = vpop.f32.mrf.mxu1  ;;  %v2545_v5 = vadd.f32 %v3228_v13, %v2481_v41  ;;  %v2744_v41 = vld [vmem:[%s1098_s12] sm:$0x1] }
 0x1e4   : > { %v3230_v23 = vpop.f32.mrf.mxu0 }
 0x1e5   : > { %v3270_v28 = vpop.f32.mrf.mxu1  ;;  %v3231_v36 = vadd.f32 %v3230_v23, %v3229_v59  ;;  %v3222_v23 = vadd.f32 %v3221_v11, %v3220_v37  ;;  %v4635_v37 = vld [vmem:[#allocation5_spill] sm:$0xff]  ;;  %v4636_v11 = vld [vmem:[#allocation6_spill] sm:$0xff] }
 0x1e6   : > { %v3271_v39 = vadd.f32 %v3270_v28, %v3269_v61  ;;  %v3232_v17 = vpop.f32.mrf.mxu0  ;;  %v3265_v14 = vadd.f32 %v4636_v11, %v4635_v37  ;;  %v4638_v11 = vld [vmem:[#allocation4_spill] sm:$0xff] }
 0x1e7   : > { %v3272_v18 = vpop.f32.mrf.mxu1  ;;  %v2550_v33 = vadd.f32 %v3231_v36, %v2486_v34  ;;  %v2537_v48 = vadd.f32 %v3222_v23, %v2473_v46  ;;  %v4637_v10 = vld [vmem:[#allocation7_spill] sm:$0xff] }
 0x1e8   : > { %v3233_v26 = vpop.f32.mrf.mxu0  ;;  %v3268_v12 = vadd.f32 %v4530_v27, %v4637_v10  ;;  %v2606_v25 = vadd.f32 %v3265_v14, %v2542_v42  ;;  %v2746_v42 = vld [vmem:[%s1101_s15] sm:$0x1] }
 0x1e9   : > { %v3273_v35 = vpop.f32.mrf.mxu1  ;;  %v2614_v55 = vadd.f32 %v3271_v39, %v2550_v33  ;;  %v2601_v1 = vadd.f32 %v3262_v31, %v2537_v48 }
 0x1ea   : > { %v3299_v56 = vpop.f32.mrf.mxu0  ;;  %v2609_v32 = vadd.f32 %v3268_v12, %v2545_v5 }
 0x1eb   : > { %v3303_v29 = vpop.f32.mrf.mxu1  ;;  %v4558_v59 = vadd.f32 %v3299_v56, %v2598_v47 }
 0x1ec   : > { %v2678_v44 = vadd.f32 %v3303_v29, %v2614_v55  ;;  %v2653_v7 = vpop.f32.mrf.mxu0 }
 0x1ed   : > { %v2669_v9 = vpop.f32.mrf.mxu1  ;;  %v4552_v16 = vadd.f32 %v2653_v7, %v2590_v4 }
 0x1ee   : > { %2689 = vst [vmem:[%s4545_s18 + $0x30] sm:$0x1] %v2678_v44  ;;  %v3300_v52 = vpop.f32.mrf.mxu0  ;;  %v4565_v28 = vadd.f32 %v2669_v9, %v2606_v25  ;;  %v2696_v45 = vsel %vm2695_vm1, %v2678_v44, 0.0 }
 0x1ef   : > { %v3304_v63 = vpop.f32.mrf.mxu1  ;;  %v4562_v61 = vadd.f32 %v3300_v52, %v2601_v1 }
 0x1f0   : > { %v2656_v54 = vpop.f32.mrf.mxu0 }
 0x1f1   : > { %v4554_v19 = vadd.f32 %v2656_v54, %v2593_v8  ;;  %v2672_v58 = vpop.f32.mrf.mxu1 }
 0x1f2   : > { %v2673_v36 = vadd.f32 %v2672_v58, %v2609_v32 }
 0x1f3   : > { %v2690_v21 = vadd.f32 %v4554_v19, %v4552_v16 }
 0x1f5   : > { %v2691_v53 = vadd.f32 %v2690_v21, %v4558_v59  ;;  %v2712_v24 = vld [vmem:[%s4545_s18 + $0x30] sm:$0x1] }
 0x1f7   : > { %v2692_v34 = vadd.f32 %v2691_v53, %v4562_v61 }
 0x1f9   : > { %v2693_v27 = vadd.f32 %v2692_v34, %v4565_v28 }
 0x1fb   : > { %v2694_v39 = vadd.f32 %v2693_v27, %v2673_v36 }
 0x1fd   : > { %v2697_v17 = vadd.f32 %v2696_v45, %v2694_v39 }
 0x1ff   : > { %v2698_v18 = vrot.slane %v2697_v17, 4 }
 0x201   : > { %v2699_v22 = vadd.f32 %v2698_v18, %v2697_v17 }
 0x203   : > { %v2700_v30 = vrot.slane %v2699_v22, 2 }
 0x205   : > { %v2701_v33 = vadd.f32 %v2700_v30, %v2699_v22 }
 0x207   : > { %v2702_v50 = vrot.slane %v2701_v33, 1 }
 0x209   : > { %v2703_v20 = vadd.f32 %v2702_v50, %v2701_v33 }
 0x20b   : > { %v2705_v26 = vmul.f32 0.020408163, %v2703_v20 }
 0x20d   : > { %v2713_v35 = vsub.f32 %v4552_v16, %v2705_v26  ;;  %v2714_v38 = vsub.f32 %v4554_v19, %v2705_v26  ;;  %v2715_v40 = vsub.f32 %v4558_v59, %v2705_v26  ;;  %v2716_v46 = vsub.f32 %v4562_v61, %v2705_v26 }
 0x20e   : > { %v2717_v51 = vsub.f32 %v4565_v28, %v2705_v26  ;;  %v2719_v29 = vsub.f32 %v2712_v24, %v2705_v26  ;;  %v2718_v62 = vsub.f32 %v2673_v36, %v2705_v26 }
 0x20f   : > { %v2720_v55 = vmul.f32 %v2713_v35, %v2713_v35  ;;  %v2721_v60 = vmul.f32 %v2714_v38, %v2714_v38  ;;  %v2722_v23 = vmul.f32 %v2715_v40, %v2715_v40  ;;  %v2723_v0 = vmul.f32 %v2716_v46, %v2716_v46 }
 0x210   : > { %v2724_v44 = vmul.f32 %v2717_v51, %v2717_v51  ;;  %v2726_v57 = vmul.f32 %v2719_v29, %v2719_v29  ;;  %v2725_v6 = vmul.f32 %v2718_v62, %v2718_v62 }
 0x211   : > { %v2727_v56 = vadd.f32 %v2721_v60, %v2720_v55 }
 0x212   : > { %v2732_v9 = vsel %vm2695_vm1, %v2726_v57, 0.0 }
 0x213   : > { %v2728_v43 = vadd.f32 %v2727_v56, %v2722_v23 }
 0x215   : > { %v2729_v3 = vadd.f32 %v2728_v43, %v2723_v0 }
 0x217   : > { %v2730_v49 = vadd.f32 %v2729_v3, %v2724_v44 }
 0x219   : > { %v2731_v7 = vadd.f32 %v2730_v49, %v2725_v6 }
 0x21b   : > { %v2733_v15 = vadd.f32 %v2732_v9, %v2731_v7 }
 0x21d   : > { %v2734_v48 = vrot.slane %v2733_v15, 4 }
 0x21f   : > { %v2735_v31 = vadd.f32 %v2734_v48, %v2733_v15 }
 0x221   : > { %v2736_v52 = vrot.slane %v2735_v31, 2 }
 0x223   : > { %v2737_v63 = vadd.f32 %v2736_v52, %v2735_v31 }
 0x225   : > { %v2738_v2 = vrot.slane %v2737_v63, 1 }
 0x227   : > { %v2739_v13 = vadd.f32 %v2738_v2, %v2737_v63 }
 0x229   : > { %v2741_v4 = vmul.f32 0.020408163, %v2739_v13 }
 0x22b   : > { %v2742_v8 = vadd.f32 1e-05, %v2741_v4 }
 0x22d   : > { %3446 = vrsqrt.f32 %v2742_v8 }
 0x23a   : > { %v3447_v47 = vpop.eup %3446 }
 0x23b   : > { %v2745_v54 = vmul.f32 %v3447_v47, %v2744_v41 }
 0x23d   : > { %v2747_v37 = vmul.f32 %v2745_v54, %v2705_v26  ;;  %v2752_v14 = vrot.slane %v2745_v54, %v4638_v11 }
 0x23f   : > { %v2748_v1 = vsub.f32 %v2746_v42, %v2747_v37  ;;  %v2753_v5 = vmul.f32 %v2752_v14, %v4552_v16  ;;  %v2754_v10 = vmul.f32 %v2752_v14, %v4554_v19  ;;  %v2755_v12 = vmul.f32 %v2752_v14, %v4558_v59 }
 0x240   : > { %v2756_v21 = vmul.f32 %v2752_v14, %v4562_v61  ;;  %v2757_v53 = vmul.f32 %v2752_v14, %v4565_v28  ;;  %v2758_v58 = vmul.f32 %v2752_v14, %v2673_v36  ;;  %v2759_v32 = vmul.f32 %v2752_v14, %v2712_v24 }
 0x241   : > { %v2764_v25 = vrot.slane %v2748_v1, %v4638_v11 }
 0x243   : > { %v2766_v34 = vadd.f32 %v2764_v25, %v2753_v5  ;;  %v2767_v16 = vadd.f32 %v2764_v25, %v2754_v10  ;;  %v2768_v27 = vadd.f32 %v2764_v25, %v2755_v12  ;;  %v2769_v39 = vadd.f32 %v2764_v25, %v2756_v21 }
 0x244   : > { %v2770_v19 = vadd.f32 %v2764_v25, %v2757_v53  ;;  %v2771_v45 = vadd.f32 %v2764_v25, %v2758_v58  ;;  %v2772_v17 = vadd.f32 %v2764_v25, %v2759_v32  ;;  %2786 = sbr.rel (!%p3533_p5) target bundleno = 593 (0x251), region = 85 }
 0x245   : > { %2773 = vst [vmem:[%s4545_s18] sm:$0xff] %v2766_v34  ;;  %2774 = vst [vmem:[%s4545_s18 + $0x8] sm:$0xff] %v2767_v16 }
 0x246   : > { %2775 = vst [vmem:[%s4545_s18 + $0x10] sm:$0xff] %v2768_v27  ;;  %2776 = vst [vmem:[%s4545_s18 + $0x18] sm:$0xff] %v2769_v39 }
 0x247   : > { %2777 = vst [vmem:[%s4545_s18 + $0x20] sm:$0xff] %v2770_v19  ;;  %2778 = vst [vmem:[%s4545_s18 + $0x28] sm:$0xff] %v2771_v45 }
 0x248   : > { %2779 = vst [vmem:[%s4545_s18 + $0x30] sm:$0x1] %v2772_v17 }
 0x24c   : > { %v2829_v59 = vld [vmem:[%s4545_s18] sm:$0xff]  ;;  %v2831_v61 = vld [vmem:[%s4545_s18 + $0x8] sm:$0xff] }
 0x24d   : > { %v2833_v28 = vld [vmem:[%s4545_s18 + $0x10] sm:$0xff]  ;;  %v2835_v36 = vld [vmem:[%s4545_s18 + $0x18] sm:$0xff]  ;;  %2830 = vst [vmem:[%s2788_s24] sm:$0xff] %v2829_v59  ;;  %2832 = vst [vmem:[%s2788_s24 + $0x18] sm:$0xff] %v2831_v61 }
 0x24e   : > { %v2837_v18 = vld [vmem:[%s4545_s18 + $0x20] sm:$0xff]  ;;  %v2839_v22 = vld [vmem:[%s4545_s18 + $0x28] sm:$0xff]  ;;  %2834 = vst [vmem:[%s2788_s24 + $0x30] sm:$0xff] %v2833_v28  ;;  %2836 = vst [vmem:[%s2788_s24 + $0x48] sm:$0xff] %v2835_v36 }
 0x24f   : > { %2838 = vst [vmem:[%s2788_s24 + $0x60] sm:$0xff] %v2837_v18  ;;  %2840 = vst [vmem:[%s2788_s24 + $0x78] sm:$0xff] %v2839_v22  ;;  %v2841_v30 = vld [vmem:[%s4545_s18 + $0x30] sm:$0xff] }
 0x250   : > { %2842 = vst [vmem:[%s2788_s24 + $0x90] sm:$0xff] %v2841_v30 }
 0x251 PF: > { %p12_p11 = scmp.ge.s32.totalorder %s3521_s22, 5   ;;  %s4639_s18 = smov %s3466_s19 }
 0x252   : > { %s4640_s19 = smov %s3531_s25  ;;  %s4641_s20 = smov %s3521_s22 }
 0x253   :  { %14 = sbr.rel (!%p12_p11) target bundleno = 2 (0x2), region = 160 }

</bundles_post_ra>
